<compile_context>
chip_gen: v7x
topology: tpu7x:2x2x1
jax: 0.10.0
libtpu: 0.0.40
codegen_flags: <defaults>
</compile_context>

<pallas_src>
import jax
import jax.numpy as jnp
from jax.experimental import pallas as pl
from jax.experimental.pallas import tpu as pltpu


# ---------------------------------------------------------------------------
# Pallas kernel: one (tm, K) x (K, 256) MXU matmul tile + f32 bias add.
# ---------------------------------------------------------------------------
def _mmb_kernel(a_ref, w_ref, b_ref, o_ref):
    o_ref[...] = (
        jnp.dot(a_ref[...], w_ref[...], preferred_element_type=jnp.float32)
        + b_ref[...]
    )


# ---------------------------------------------------------------------------
# Tiling helpers.
# ---------------------------------------------------------------------------
def _round_up(x, m):
    return ((x + m - 1) // m) * m


def _pick_tm(m):
    """Row-tile size. m (#patch rows) is static at trace time."""
    if m <= 8:
        return m                                   # one full block, no masking
    if m <= 1024:
        # >=2 grid steps (keeps both v7x TensorCores busy), multiple of 8;
        # tail block is masked by Pallas.
        return min(512, _round_up((m + 1) // 2, 8))
    if m <= 4096:
        return 512                                 # ~10 MiB working set, fits default scoped VMEM
    return 1024                                    # amortize per-step overhead; vmem limit raised below


# ---------------------------------------------------------------------------
# Wrapper: lane-dense, bf16-operand matmul + bias (f32 accumulation).
# ---------------------------------------------------------------------------
def fused_matmul_bias(a, w, bias):
    """a:(M,K) @ w:(K,N) + bias:(N,), bf16 operands, f32 accumulate.

    Only the (tiny) weight/bias are padded on N (192 -> 256 lane-dense
    stores); the activation is never padded or copied.  The M tail block is
    handled by Pallas masking via a cdiv grid.
    """
    M, K = a.shape
    K2, N = w.shape
    assert K == K2

    Np = _round_up(N, 128)

    a = a.astype(jnp.bfloat16)                     # no-op if already bf16
    wp = w.astype(jnp.bfloat16)
    bp = bias.astype(jnp.float32).reshape(1, N)
    if Np != N:
        wp = jnp.pad(wp, ((0, 0), (0, Np - N)))
        bp = jnp.pad(bp, ((0, 0), (0, Np - N)))

    tm = _pick_tm(M)
    grid_m = pl.cdiv(M, tm)

    cp_kwargs = dict(dimension_semantics=("parallel",))
    if tm > 512:
        # Double-buffered A tile + resident (double-buffered) weight +
        # double-buffered f32 output tile, plus margin.
        vmem_bytes = 2 * tm * K * 2 + 2 * K * Np * 2 + 2 * tm * Np * 4 + (4 << 20)
        cp_kwargs["vmem_limit_bytes"] = int(vmem_bytes)

    out = pl.pallas_call(
        _mmb_kernel,
        out_shape=jax.ShapeDtypeStruct((M, Np), jnp.float32),
        grid=(grid_m,),
        in_specs=[
            pl.BlockSpec((tm, K), lambda i: (i, 0)),     # activation tiles, streamed
            pl.BlockSpec((K, Np), lambda i: (0, 0)),     # weight: constant index -> DMA'd once
            pl.BlockSpec((1, Np), lambda i: (0, 0)),     # bias: resident
        ],
        out_specs=pl.BlockSpec((tm, Np), lambda i: (i, 0)),
        compiler_params=pltpu.CompilerParams(**cp_kwargs),
    )(a, wp, bp)

    return out[:, :N]


# ---------------------------------------------------------------------------
# CS_DownSample_x4 forward
# ---------------------------------------------------------------------------
def cs_downsample_x4(x_nchw, w_torch, bias):
    """Conv2d(3->192, k=32, s=32) + rearrange 'b (c a1 a2) h w -> b c (h a1) (w a2)'.

    x_nchw : (B, 3, H, W) float32, H and W multiples of 32.
    w_torch: (192, 3, 32, 32) PyTorch conv weight layout.
    bias   : (192,)
    returns: (B, 3, (H//32)*8, (W//32)*8) float32
    """
    B, C, H, W = x_nchw.shape
    assert C == 3, "CS_DownSample_x4 expects 3 input channels"
    assert H % 32 == 0 and W % 32 == 0, "H, W must be multiples of 32"
    h, w = H // 32, W // 32

    # Cast FIRST: XLA fuses the f32->bf16 convert into the im2col transpose,
    # so the full-activation pre-pass reads f32 once and writes bf16.
    xb = x_nchw.astype(jnp.bfloat16)

    # Non-overlapping 32x32 patches, flattened in (c, kh, kw) order —
    # identical to PyTorch's conv-weight flattening, so the conv is a matmul.
    patches = (
        xb.reshape(B, C, h, 32, w, 32)
        .transpose(0, 2, 4, 1, 3, 5)
        .reshape(B * h * w, C * 32 * 32)                  # (B*h*w, 3072) bf16
    )
    wm = w_torch.reshape(w_torch.shape[0], -1).T          # (3072, 192)

    out = fused_matmul_bias(patches, wm, bias)            # (B*h*w, 192) f32

    # rearrange: channel 192 = (c=3, a1=8, a2=8)
    out = (
        out.reshape(B, h, w, 3, 8, 8)
        .transpose(0, 3, 1, 4, 2, 5)
        .reshape(B, 3, h * 8, w * 8)
    )
    return out


# ---------------------------------------------------------------------------
# Plain-JAX f32 reference (same patch-matmul formulation) for a sanity check.
# ---------------------------------------------------------------------------
def _reference(x_nchw, w_torch, bias):
    B, C, H, W = x_nchw.shape
    h, w = H // 32, W // 32
    patches = (
        x_nchw.reshape(B, C, h, 32, w, 32)
        .transpose(0, 2, 4, 1, 3, 5)
        .reshape(B * h * w, C * 32 * 32)
    )
    wm = w_torch.reshape(w_torch.shape[0], -1).T
    out = patches @ wm + bias[None, :]
    return (
        out.reshape(B, h, w, 3, 8, 8)
        .transpose(0, 3, 1, 4, 2, 5)
        .reshape(B, 3, h * 8, w * 8)
    )


# ---------------------------------------------------------------------------
if __name__ == "__main__":
    key = jax.random.PRNGKey(0)
    kw_, kb_, kx_ = jax.random.split(key, 3)

    # Conv2d(3, 8*8*3=192, kernel_size=32, stride=32) parameters.
    w = (0.02 * jax.random.normal(kw_, (8 * 8 * 3, 3, 32, 32))).astype(jnp.float32)
    b = (0.02 * jax.random.normal(kb_, (8 * 8 * 3,))).astype(jnp.float32)

    fwd = jax.jit(cs_downsample_x4)

    # Case 1: (2,3,64,64)  -> M=8   (single full block).
    # Case 2: (2,3,96,96)  -> M=18  (2-step grid with a masked tail block).
    for Hs, Ws in ((64, 64), (96, 96)):
        x = jax.random.uniform(kx_, (2, 3, Hs, Ws), dtype=jnp.float32)
        y = fwd(x, w, b)
        jax.block_until_ready(y)

        assert y.shape == (2, 3, (Hs // 32) * 8, (Ws // 32) * 8), y.shape
        assert bool(jnp.all(jnp.isfinite(y)))

        # Loose tolerance: kernel uses bf16 operands with f32 accumulation.
        ref = _reference(x, w, b)
        max_err = float(jnp.max(jnp.abs(y - ref)))
        assert max_err < 3e-2, f"max abs error vs f32 reference ({Hs}x{Ws}): {max_err}"

    print("KERNEL_OK")
</pallas_src>

<mosaic_0001>
module attributes {stable_mosaic.version = 11 : i64} {
  func.func @_mmb_kernel(%arg0: i32, %arg1: memref<8x3072xbf16, #tpu.memory_space<vmem>>, %arg2: memref<3072x256xbf16, #tpu.memory_space<vmem>>, %arg3: memref<1x256xf32, #tpu.memory_space<vmem>>, %arg4: memref<8x256xf32, #tpu.memory_space<vmem>>) attributes {dimension_semantics = [#tpu.dimension_semantics<parallel>], iteration_bounds = array<i64: 1>, scalar_prefetch = 0 : i64, scratch_operands = 0 : i64, tpu.core_type = #tpu.core_type<tc>, window_params = [{transform_indices = @transform_0, window_bounds = array<i64: 8, 3072>}, {pipeline_mode = #tpu.pipeline_mode<synchronous>, transform_indices = @transform_1, window_bounds = array<i64: 3072, 256>}, {pipeline_mode = #tpu.pipeline_mode<synchronous>, transform_indices = @transform_2, window_bounds = array<i64: 1, 256>}, {transform_indices = @transform_3, window_bounds = array<i64: 8, 256>}]} {
    %c0 = arith.constant 0 : index
    %c0_0 = arith.constant 0 : index
    %0 = vector.load %arg1[%c0, %c0_0] : memref<8x3072xbf16, #tpu.memory_space<vmem>>, vector<8x3072xbf16>
    %c0_1 = arith.constant 0 : index
    %c0_2 = arith.constant 0 : index
    %1 = vector.load %arg2[%c0_1, %c0_2] : memref<3072x256xbf16, #tpu.memory_space<vmem>>, vector<3072x256xbf16>
    %cst = arith.constant dense<0.000000e+00> : vector<8x256xf32>
    %2 = tpu.matmul %0, %1, %cst {dimension_numbers = #tpu.dot_dimension_numbers<[1], [0], [0], [1], [0, 0, 1, 1], [], []>} : vector<8x3072xbf16>, vector<3072x256xbf16>, vector<8x256xf32> -> vector<8x256xf32>
    %c0_3 = arith.constant 0 : index
    %c0_4 = arith.constant 0 : index
    %3 = vector.load %arg3[%c0_3, %c0_4] : memref<1x256xf32, #tpu.memory_space<vmem>>, vector<1x256xf32>
    %4 = vector.broadcast %3 : vector<1x256xf32> to vector<8x256xf32>
    %5 = arith.addf %2, %4 : vector<8x256xf32>
    %c0_5 = arith.constant 0 : index
    %c0_6 = arith.constant 0 : index
    %6 = vector.load %arg4[%c0_5, %c0_6] : memref<8x256xf32, #tpu.memory_space<vmem>>, vector<8x256xf32>
    tpu.vector_store %arg4[%c0_5, %c0_6], %5 {strides = array<i32>} : memref<8x256xf32, #tpu.memory_space<vmem>>, vector<8x256xf32>,
    return
  }
  func.func @transform_0(%arg0: i32) -> (i32, i32) {
    %c0_i32 = arith.constant 0 : i32
    %c0_i32_0 = arith.constant 0 : i32
    return %arg0, %c0_i32 : i32, i32
  }
  func.func @transform_1(%arg0: i32) -> (i32, i32) {
    %c0_i32 = arith.constant 0 : i32
    %c0_i32_0 = arith.constant 0 : i32
    %c0_i32_1 = arith.constant 0 : i32
    return %c0_i32, %c0_i32_0 : i32, i32
  }
  func.func @transform_2(%arg0: i32) -> (i32, i32) {
    %c0_i32 = arith.constant 0 : i32
    %c0_i32_0 = arith.constant 0 : i32
    %c0_i32_1 = arith.constant 0 : i32
    return %c0_i32, %c0_i32_0 : i32, i32
  }
  func.func @transform_3(%arg0: i32) -> (i32, i32) {
    %c0_i32 = arith.constant 0 : i32
    %c0_i32_0 = arith.constant 0 : i32
    return %arg0, %c0_i32 : i32, i32
  }
}

</mosaic_0001>

<bundles_post_ra>
// kernel: cs_downsample_x4.1
= control target key start
LH: loop header
LB: loop body
LE: loop exit
PB: predicated region body
PF: predicated region fallthrough
CT: control target
= control target key end

     0   :  { %s5253_s1 = inlined_call_operand.vmem [shape: bf16[3072,256], index: 1, kind: input, shape index: {}]   ;;  %s5254_s0 = inlined_call_operand.vmem [shape: bf16[8,3072], index: 0, kind: input, shape index: {}]   ;;  %s5255_s2 = inlined_call_operand.vmem [shape: f32[1,256], index: 2, kind: input, shape index: {}]   ;;  %s5256_s3 = inlined_call_operand.vmem [shape: f32[8,256], index: 3, kind: output, shape index: {}]  }
   0x1   :  { %v3376_v0 = vld [vmem:[%s5253_s1 + $0x4] ss:$8 sps:$4 sm:$0xff]   ;;  %v3380_v2 = vld [vmem:[%s5253_s1] ss:$8 sps:$4 sm:$0xff]   ;;  %v3382_v4 = vld [vmem:[%s5253_s1 + $0x14] ss:$8 sps:$4 sm:$0xff]  }
   0x2   :  { %v3378_v1 = vld [vmem:[%s5253_s1 + $0x604] ss:$8 sps:$4 sm:$0xff]   ;;  %2426 = vmatprep.subr.bf16.mxu1 %v3376_v0  ;;  %v3381_v3 = vld [vmem:[%s5253_s1 + $0x600] ss:$8 sps:$4 sm:$0xff]   ;;  %v3384_v5 = vld [vmem:[%s5253_s1 + $0x614] ss:$8 sps:$4 sm:$0xff]  }
   0x3   :  { %2672 = vmatprep.subr.bf16.mxu0 %v3378_v1  ;;  %2427 = vmatpush1.bf16.msra.mxu1 %v3380_v2  ;;  %v3386_v6 = vld [vmem:[%s5253_s1 + $0x10] ss:$8 sps:$4 sm:$0xff]   ;;  %v3388_v8 = vld [vmem:[%s5253_s1 + $0x24] ss:$8 sps:$4 sm:$0xff]   ;;  %v3392_v10 = vld [vmem:[%s5253_s1 + $0x20] ss:$8 sps:$4 sm:$0xff]  }
   0x4   :  { %2673 = vmatpush1.bf16.msra.mxu0 %v3381_v3  ;;  %2428 = vmatprep.subr.bf16.mxu1 %v3382_v4  ;;  %v3387_v7 = vld [vmem:[%s5253_s1 + $0x610] ss:$8 sps:$4 sm:$0xff]   ;;  %v3390_v9 = vld [vmem:[%s5253_s1 + $0x624] ss:$8 sps:$4 sm:$0xff]   ;;  %v3393_v11 = vld [vmem:[%s5253_s1 + $0x620] ss:$8 sps:$4 sm:$0xff]  }
   0x5   :  { %2674 = vmatprep.subr.bf16.mxu0 %v3384_v5  ;;  %v3394_v12 = vld [vmem:[%s5253_s1 + $0x34] ss:$8 sps:$4 sm:$0xff]   ;;  %v3398_v14 = vld [vmem:[%s5253_s1 + $0x30] ss:$8 sps:$4 sm:$0xff]   ;;  %v3400_v16 = vld [vmem:[%s5253_s1 + $0x44] ss:$8 sps:$4 sm:$0xff]  }
   0x6   :  { %v3396_v13 = vld [vmem:[%s5253_s1 + $0x634] ss:$8 sps:$4 sm:$0xff]   ;;  %v3399_v15 = vld [vmem:[%s5253_s1 + $0x630] ss:$8 sps:$4 sm:$0xff]   ;;  %v3402_v17 = vld [vmem:[%s5253_s1 + $0x644] ss:$8 sps:$4 sm:$0xff]  }
   0x7   :  { %2429 = vmatpush1.bf16.msra.mxu1 %v3386_v6  ;;  %v3404_v18 = vld [vmem:[%s5253_s1 + $0x40] ss:$8 sps:$4 sm:$0xff]   ;;  %v3406_v20 = vld [vmem:[%s5253_s1 + $0x54] ss:$8 sps:$4 sm:$0xff]   ;;  %v3410_v22 = vld [vmem:[%s5253_s1 + $0x50] ss:$8 sps:$4 sm:$0xff]  }
   0x8   :  { %2675 = vmatpush1.bf16.msra.mxu0 %v3387_v7  ;;  %2430 = vmatprep.subr.bf16.mxu1 %v3388_v8  ;;  %v3405_v19 = vld [vmem:[%s5253_s1 + $0x640] ss:$8 sps:$4 sm:$0xff]   ;;  %v3408_v21 = vld [vmem:[%s5253_s1 + $0x654] ss:$8 sps:$4 sm:$0xff]   ;;  %v3411_v23 = vld [vmem:[%s5253_s1 + $0x650] ss:$8 sps:$4 sm:$0xff]  }
   0x9   :  { %2676 = vmatprep.subr.bf16.mxu0 %v3390_v9  ;;  %v3412_v24 = vld [vmem:[%s5253_s1 + $0x64] ss:$8 sps:$4 sm:$0xff]   ;;  %v3416_v26 = vld [vmem:[%s5253_s1 + $0x60] ss:$8 sps:$4 sm:$0xff]   ;;  %v3418_v28 = vld [vmem:[%s5253_s1 + $0x74] ss:$8 sps:$4 sm:$0xff]  }
   0xa   :  { %v3414_v25 = vld [vmem:[%s5253_s1 + $0x664] ss:$8 sps:$4 sm:$0xff]   ;;  %v3417_v27 = vld [vmem:[%s5253_s1 + $0x660] ss:$8 sps:$4 sm:$0xff]   ;;  %v3420_v29 = vld [vmem:[%s5253_s1 + $0x674] ss:$8 sps:$4 sm:$0xff]  }
   0xb   :  { %2431 = vmatpush1.bf16.msra.mxu1 %v3392_v10  ;;  %v3422_v30 = vld [vmem:[%s5253_s1 + $0x70] ss:$8 sps:$4 sm:$0xff]   ;;  %v3424_v32 = vld [vmem:[%s5253_s1 + $0x84] ss:$8 sps:$4 sm:$0xff]   ;;  %v3428_v34 = vld [vmem:[%s5253_s1 + $0x80] ss:$8 sps:$4 sm:$0xff]  }
   0xc   :  { %2677 = vmatpush1.bf16.msra.mxu0 %v3393_v11  ;;  %2432 = vmatprep.subr.bf16.mxu1 %v3394_v12  ;;  %v3423_v31 = vld [vmem:[%s5253_s1 + $0x670] ss:$8 sps:$4 sm:$0xff]   ;;  %v3426_v33 = vld [vmem:[%s5253_s1 + $0x684] ss:$8 sps:$4 sm:$0xff]   ;;  %v3429_v35 = vld [vmem:[%s5253_s1 + $0x680] ss:$8 sps:$4 sm:$0xff]  }
   0xd   :  { %2678 = vmatprep.subr.bf16.mxu0 %v3396_v13  ;;  %v3430_v36 = vld [vmem:[%s5253_s1 + $0x94] ss:$8 sps:$4 sm:$0xff]   ;;  %v3434_v38 = vld [vmem:[%s5253_s1 + $0x90] ss:$8 sps:$4 sm:$0xff]   ;;  %v3436_v40 = vld [vmem:[%s5253_s1 + $0xa4] ss:$8 sps:$4 sm:$0xff]  }
   0xe   :  { %v3432_v37 = vld [vmem:[%s5253_s1 + $0x694] ss:$8 sps:$4 sm:$0xff]   ;;  %v3435_v39 = vld [vmem:[%s5253_s1 + $0x690] ss:$8 sps:$4 sm:$0xff]   ;;  %v3438_v41 = vld [vmem:[%s5253_s1 + $0x6a4] ss:$8 sps:$4 sm:$0xff]  }
   0xf   :  { %2433 = vmatpush1.bf16.msra.mxu1 %v3398_v14  ;;  %v3440_v42 = vld [vmem:[%s5253_s1 + $0xa0] ss:$8 sps:$4 sm:$0xff]   ;;  %v3442_v44 = vld [vmem:[%s5253_s1 + $0xb4] ss:$8 sps:$4 sm:$0xff]   ;;  %v3446_v47 = vld [vmem:[%s5253_s1 + $0xb0] ss:$8 sps:$4 sm:$0xff]  }
  0x10   :  { %2679 = vmatpush1.bf16.msra.mxu0 %v3399_v15  ;;  %2434 = vmatprep.subr.bf16.mxu1 %v3400_v16  ;;  %v3441_v43 = vld [vmem:[%s5253_s1 + $0x6a0] ss:$8 sps:$4 sm:$0xff]   ;;  %v3444_v45 = vld [vmem:[%s5253_s1 + $0x6b4] ss:$8 sps:$4 sm:$0xff]   ;;  %v3447_v49 = vld [vmem:[%s5253_s1 + $0x6b0] ss:$8 sps:$4 sm:$0xff]  }
  0x11   :  { %2680 = vmatprep.subr.bf16.mxu0 %v3402_v17  ;;  %v14_v46 = vld [vmem:[%s5254_s0] sm:$0xff]  ;;  %v20_v50 = vld [vmem:[%s5254_s0 + $0x30] sm:$0xff] }
  0x12   :  { %v2925_v48 = vcombine.high %v14_v46, %v14_v46  ;;  %v3448_v51 = vld [vmem:[%s5253_s1 + $0xc4] ss:$8 sps:$4 sm:$0xff]   ;;  %v2937_v53 = vcombine.high %v20_v50, %v20_v50  ;;  %v3452_v54 = vld [vmem:[%s5253_s1 + $0xc0] ss:$8 sps:$4 sm:$0xff]   ;;  %v3454_v56 = vld [vmem:[%s5253_s1 + $0xd4] ss:$8 sps:$4 sm:$0xff]   ;;  %v2924_v6 = vcombine.low %v14_v46, %v14_v46  ;;  %v2936_v7 = vcombine.low %v20_v50, %v20_v50 }
  0x13   :  { %2435 = vmatpush1.bf16.msra.mxu1 %v3404_v18  ;;  %v3450_v52 = vld [vmem:[%s5253_s1 + $0x6c4] ss:$8 sps:$4 sm:$0xff]   ;;  %v3453_v55 = vld [vmem:[%s5253_s1 + $0x6c0] ss:$8 sps:$4 sm:$0xff]   ;;  %v3456_v57 = vld [vmem:[%s5253_s1 + $0x6d4] ss:$8 sps:$4 sm:$0xff]  }
  0x14   :  { %2681 = vmatpush1.bf16.msra.mxu0 %v3405_v19  ;;  %2436 = vmatprep.subr.bf16.mxu1 %v3406_v20  ;;  %v3458_v58 = vld [vmem:[%s5253_s1 + $0xd0] ss:$8 sps:$4 sm:$0xff]   ;;  %v3460_v60 = vld [vmem:[%s5253_s1 + $0xe4] ss:$8 sps:$4 sm:$0xff]   ;;  %v3464_v62 = vld [vmem:[%s5253_s1 + $0xe0] ss:$8 sps:$4 sm:$0xff]  }
  0x15   :  { %2682 = vmatprep.subr.bf16.mxu0 %v3408_v21  ;;  %2458 = vmatprep.mubr.bf16.mxu1 %v2925_v48  ;;  %v3459_v59 = vld [vmem:[%s5253_s1 + $0x6d0] ss:$8 sps:$4 sm:$0xff]   ;;  %v3462_v61 = vld [vmem:[%s5253_s1 + $0x6e4] ss:$8 sps:$4 sm:$0xff]   ;;  %v3465_v63 = vld [vmem:[%s5253_s1 + $0x6e0] ss:$8 sps:$4 sm:$0xff]  }
  0x16   :  { %2704 = vmatprep.mubr.bf16.mxu0 %v2937_v53  ;;  %v3466_v0 = vld [vmem:[%s5253_s1 + $0xf4] ss:$8 sps:$4 sm:$0xff]   ;;  %v3470_v2 = vld [vmem:[%s5253_s1 + $0xf0] ss:$8 sps:$4 sm:$0xff]   ;;  %v3476_v4 = vld [vmem:[%s5253_s1 + $0x104] ss:$8 sps:$4 sm:$0xff]  }
  0x17   :  { %2437 = vmatpush1.bf16.msra.mxu1 %v3410_v22  ;;  %v3468_v1 = vld [vmem:[%s5253_s1 + $0x6f4] ss:$8 sps:$4 sm:$0xff]   ;;  %v3471_v3 = vld [vmem:[%s5253_s1 + $0x6f0] ss:$8 sps:$4 sm:$0xff]   ;;  %v3481_v5 = vld [vmem:[%s5253_s1 + $0x704] ss:$8 sps:$4 sm:$0xff]  }
  0x18   :  { %2683 = vmatpush1.bf16.msra.mxu0 %v3411_v23  ;;  %2438 = vmatprep.subr.bf16.mxu1 %v3412_v24  ;;  %v3474_v8 = vld [vmem:[%s5253_s1 + $0x100] ss:$8 sps:$4 sm:$0xff]   ;;  %v3484_v10 = vld [vmem:[%s5253_s1 + $0x114] ss:$8 sps:$4 sm:$0xff]   ;;  %v3482_v12 = vld [vmem:[%s5253_s1 + $0x110] ss:$8 sps:$4 sm:$0xff]  }
  0x19   :  { %2684 = vmatprep.subr.bf16.mxu0 %v3414_v25  ;;  %v3479_v9 = vld [vmem:[%s5253_s1 + $0x700] ss:$8 sps:$4 sm:$0xff]   ;;  %v3487_v11 = vld [vmem:[%s5253_s1 + $0x714] ss:$8 sps:$4 sm:$0xff]   ;;  %v3485_v13 = vld [vmem:[%s5253_s1 + $0x710] ss:$8 sps:$4 sm:$0xff]  }
  0x1a   :  { %v3490_v14 = vld [vmem:[%s5253_s1 + $0x124] ss:$8 sps:$4 sm:$0xff]   ;;  %v3488_v16 = vld [vmem:[%s5253_s1 + $0x120] ss:$8 sps:$4 sm:$0xff]   ;;  %v3496_v18 = vld [vmem:[%s5253_s1 + $0x134] ss:$8 sps:$4 sm:$0xff]  }
  0x1b   :  { %2439 = vmatpush1.bf16.msra.mxu1 %v3416_v26  ;;  %v3493_v15 = vld [vmem:[%s5253_s1 + $0x724] ss:$8 sps:$4 sm:$0xff]   ;;  %v3491_v17 = vld [vmem:[%s5253_s1 + $0x720] ss:$8 sps:$4 sm:$0xff]   ;;  %v3499_v19 = vld [vmem:[%s5253_s1 + $0x734] ss:$8 sps:$4 sm:$0xff]  }
  0x1c   :  { %2685 = vmatpush1.bf16.msra.mxu0 %v3417_v27  ;;  %2440 = vmatprep.subr.bf16.mxu1 %v3418_v28  ;;  %v3494_v20 = vld [vmem:[%s5253_s1 + $0x130] ss:$8 sps:$4 sm:$0xff]   ;;  %v3502_v22 = vld [vmem:[%s5253_s1 + $0x144] ss:$8 sps:$4 sm:$0xff]   ;;  %v3500_v24 = vld [vmem:[%s5253_s1 + $0x140] ss:$8 sps:$4 sm:$0xff]  }
  0x1d   :  { %2686 = vmatprep.subr.bf16.mxu0 %v3420_v29  ;;  %v3497_v21 = vld [vmem:[%s5253_s1 + $0x730] ss:$8 sps:$4 sm:$0xff]   ;;  %v3505_v23 = vld [vmem:[%s5253_s1 + $0x744] ss:$8 sps:$4 sm:$0xff]   ;;  %v3503_v25 = vld [vmem:[%s5253_s1 + $0x740] ss:$8 sps:$4 sm:$0xff]  }
  0x1e   :  { %v3508_v26 = vld [vmem:[%s5253_s1 + $0x154] ss:$8 sps:$4 sm:$0xff]   ;;  %v3506_v28 = vld [vmem:[%s5253_s1 + $0x150] ss:$8 sps:$4 sm:$0xff]   ;;  %v3538_v50 = vld [vmem:[%s5253_s1 + $0x1a4] ss:$8 sps:$4 sm:$0xff]  }
  0x1f   :  { %2441 = vmatpush1.bf16.msra.mxu1 %v3422_v30  ;;  %v3511_v27 = vld [vmem:[%s5253_s1 + $0x754] ss:$8 sps:$4 sm:$0xff]   ;;  %v3509_v29 = vld [vmem:[%s5253_s1 + $0x750] ss:$8 sps:$4 sm:$0xff]   ;;  %v3514_v30 = vld [vmem:[%s5253_s1 + $0x164] ss:$8 sps:$4 sm:$0xff]  }
  0x20   :  { %2687 = vmatpush1.bf16.msra.mxu0 %v3423_v31  ;;  %2442 = vmatprep.subr.bf16.mxu1 %v3424_v32  ;;  %v3517_v31 = vld [vmem:[%s5253_s1 + $0x764] ss:$8 sps:$4 sm:$0xff]   ;;  %v3532_v46 = vld [vmem:[%s5253_s1 + $0x194] ss:$8 sps:$4 sm:$0xff]   ;;  %v3530_v48 = vld [vmem:[%s5253_s1 + $0x190] ss:$8 sps:$4 sm:$0xff]  }
  0x21   :  { %2688 = vmatprep.subr.bf16.mxu0 %v3426_v33  ;;  %v4275_v32 = vld [vmem:[%s5254_s0 + $0x8] sm:$0xff] }
  0x22   :  { %v3512_v33 = vld [vmem:[%s5253_s1 + $0x160] ss:$8 sps:$4 sm:$0xff]  }
  0x23   :  { %2443 = vmatpush1.bf16.msra.mxu1 %v3428_v34  ;;  %v3515_v34 = vld [vmem:[%s5253_s1 + $0x760] ss:$8 sps:$4 sm:$0xff]  }
  0x24   :  { %2689 = vmatpush1.bf16.msra.mxu0 %v3429_v35  ;;  %2444 = vmatprep.subr.bf16.mxu1 %v3430_v36  ;;  %v2927_v35 = vcombine.high %v4275_v32, %v4275_v32  ;;  %v4288_v36 = vld [vmem:[%s5254_s0 + $0x38] sm:$0xff]  ;;  %v3539_v53 = vld [vmem:[%s5253_s1 + $0x7a0] ss:$8 sps:$4 sm:$0xff]  }
  0x25   :  { %2690 = vmatprep.subr.bf16.mxu0 %v3432_v37  ;;  %v3520_v37 = vld [vmem:[%s5253_s1 + $0x174] ss:$8 sps:$4 sm:$0xff]  }
  0x27   :  { %2445 = vmatpush1.bf16.msra.mxu1 %v3434_v38  ;;  %v2939_v38 = vcombine.high %v4288_v36, %v4288_v36 }
  0x28   :  { %2691 = vmatpush1.bf16.msra.mxu0 %v3435_v39  ;;  %2446 = vmatprep.subr.bf16.mxu1 %v3436_v40  ;;  %v3523_v39 = vld [vmem:[%s5253_s1 + $0x774] ss:$8 sps:$4 sm:$0xff]   ;;  %v3518_v40 = vld [vmem:[%s5253_s1 + $0x170] ss:$8 sps:$4 sm:$0xff]  }
  0x29   :  { %2692 = vmatprep.subr.bf16.mxu0 %v3438_v41  ;;  %v3521_v41 = vld [vmem:[%s5253_s1 + $0x770] ss:$8 sps:$4 sm:$0xff]  }
  0x2b   :  { %2447 = vmatpush1.bf16.msra.mxu1 %v3440_v42  ;;  %v3526_v42 = vld [vmem:[%s5253_s1 + $0x184] ss:$8 sps:$4 sm:$0xff]  }
  0x2c   :  { %2693 = vmatpush1.bf16.msra.mxu0 %v3441_v43  ;;  %2448 = vmatprep.subr.bf16.mxu1 %v3442_v44  ;;  %v3529_v43 = vld [vmem:[%s5253_s1 + $0x784] ss:$8 sps:$4 sm:$0xff]   ;;  %v3524_v44 = vld [vmem:[%s5253_s1 + $0x180] ss:$8 sps:$4 sm:$0xff]  }
  0x2d   :  { %2694 = vmatprep.subr.bf16.mxu0 %v3444_v45  ;;  %v3527_v45 = vld [vmem:[%s5253_s1 + $0x780] ss:$8 sps:$4 sm:$0xff]  }
  0x2f   :  { %2449 = vmatpush1.bf16.msra.mxu1 %v3446_v47  ;;  %v3535_v47 = vld [vmem:[%s5253_s1 + $0x794] ss:$8 sps:$4 sm:$0xff]  }
  0x30   :  { %2695 = vmatpush1.bf16.msra.mxu0 %v3447_v49  ;;  %2450 = vmatprep.subr.bf16.mxu1 %v3448_v51  ;;  %v3533_v49 = vld [vmem:[%s5253_s1 + $0x790] ss:$8 sps:$4 sm:$0xff]   ;;  %v3541_v51 = vld [vmem:[%s5253_s1 + $0x7a4] ss:$8 sps:$4 sm:$0xff]  }
  0x31   :  { %2696 = vmatprep.subr.bf16.mxu0 %v3450_v52  ;;  %v3536_v52 = vld [vmem:[%s5253_s1 + $0x1a0] ss:$8 sps:$4 sm:$0xff]  }
  0x33   :  { %2451 = vmatpush1.bf16.msra.mxu1 %v3452_v54  ;;  %v3544_v54 = vld [vmem:[%s5253_s1 + $0x1b4] ss:$8 sps:$4 sm:$0xff]  }
  0x34   :  { %2697 = vmatpush1.bf16.msra.mxu0 %v3453_v55  ;;  %2452 = vmatprep.subr.bf16.mxu1 %v3454_v56  ;;  %v3547_v55 = vld [vmem:[%s5253_s1 + $0x7b4] ss:$8 sps:$4 sm:$0xff]   ;;  %v3542_v56 = vld [vmem:[%s5253_s1 + $0x1b0] ss:$8 sps:$4 sm:$0xff]  }
  0x35   :  { %2698 = vmatprep.subr.bf16.mxu0 %v3456_v57  ;;  %v3545_v57 = vld [vmem:[%s5253_s1 + $0x7b0] ss:$8 sps:$4 sm:$0xff]  }
  0x37   :  { %2453 = vmatpush1.bf16.msra.mxu1 %v3458_v58  ;;  %v3550_v58 = vld [vmem:[%s5253_s1 + $0x1c4] ss:$8 sps:$4 sm:$0xff]  }
  0x38   :  { %2699 = vmatpush1.bf16.msra.mxu0 %v3459_v59  ;;  %2454 = vmatprep.subr.bf16.mxu1 %v3460_v60  ;;  %v3553_v59 = vld [vmem:[%s5253_s1 + $0x7c4] ss:$8 sps:$4 sm:$0xff]   ;;  %v3548_v60 = vld [vmem:[%s5253_s1 + $0x1c0] ss:$8 sps:$4 sm:$0xff]  }
  0x39   :  { %2700 = vmatprep.subr.bf16.mxu0 %v3462_v61  ;;  %v3551_v61 = vld [vmem:[%s5253_s1 + $0x7c0] ss:$8 sps:$4 sm:$0xff]  }
  0x3b   :  { %2455 = vmatpush1.bf16.msra.mxu1 %v3464_v62  ;;  %v3556_v62 = vld [vmem:[%s5253_s1 + $0x1d4] ss:$8 sps:$4 sm:$0xff]  }
  0x3c   :  { %2701 = vmatpush1.bf16.msra.mxu0 %v3465_v63  ;;  %2456 = vmatprep.subr.bf16.mxu1 %v3466_v0  ;;  %v3559_v63 = vld [vmem:[%s5253_s1 + $0x7d4] ss:$8 sps:$4 sm:$0xff]   ;;  %v3554_v0 = vld [vmem:[%s5253_s1 + $0x1d0] ss:$8 sps:$4 sm:$0xff]  }
  0x3d   :  { %2702 = vmatprep.subr.bf16.mxu0 %v3468_v1  ;;  %v3557_v1 = vld [vmem:[%s5253_s1 + $0x7d0] ss:$8 sps:$4 sm:$0xff]  }
  0x3f   :  { %2457 = vmatpush1.bf16.msra.mxu1 %v3470_v2  ;;  %v3562_v2 = vld [vmem:[%s5253_s1 + $0x1e4] ss:$8 sps:$4 sm:$0xff]  }
  0x40   :  { %2703 = vmatpush1.bf16.msra.mxu0 %v3471_v3  ;;  %2467 = vmatprep.subr.bf16.mxu1 %v3476_v4  ;;  %v3565_v3 = vld [vmem:[%s5253_s1 + $0x7e4] ss:$8 sps:$4 sm:$0xff]   ;;  %v3560_v4 = vld [vmem:[%s5253_s1 + $0x1e0] ss:$8 sps:$4 sm:$0xff]  }
  0x41   :  { %2713 = vmatprep.subr.bf16.mxu0 %v3481_v5  ;;  %v3563_v5 = vld [vmem:[%s5253_s1 + $0x7e0] ss:$8 sps:$4 sm:$0xff]  }
  0x42   :  { %2459 = vmatmul.mubr.bf16.vlgmr.msra.gmra.mrb[0].mxu1 %v2924_v6  ;;  %v3568_v6 = vld [vmem:[%s5253_s1 + $0x1f4] ss:$8 sps:$4 sm:$0xff]  }
  0x43   :  { %2705 = vmatmul.mubr.bf16.vlgmr.msra.gmra.mrb[0].mxu0 %v2936_v7  ;;  %2468 = vmatpush1.bf16.msra.mxu1 %v3474_v8  ;;  %v3571_v7 = vld [vmem:[%s5253_s1 + $0x7f4] ss:$8 sps:$4 sm:$0xff]   ;;  %v3566_v8 = vld [vmem:[%s5253_s1 + $0x1f0] ss:$8 sps:$4 sm:$0xff]  }
  0x44   :  { %2714 = vmatpush1.bf16.msra.mxu0 %v3479_v9  ;;  %2469 = vmatprep.subr.bf16.mxu1 %v3484_v10  ;;  %v3569_v9 = vld [vmem:[%s5253_s1 + $0x7f0] ss:$8 sps:$4 sm:$0xff]   ;;  %v3576_v10 = vld [vmem:[%s5253_s1 + $0x204] ss:$8 sps:$4 sm:$0xff]  }
  0x45   :  { %2715 = vmatprep.subr.bf16.mxu0 %v3487_v11  ;;  %2499 = vmatprep.mubr.bf16.mxu1 %v2927_v35  ;;  %v3581_v11 = vld [vmem:[%s5253_s1 + $0x804] ss:$8 sps:$4 sm:$0xff]   ;;  %v3603_v35 = vld [vmem:[%s5253_s1 + $0x840] ss:$8 sps:$4 sm:$0xff]  }
  0x46   :  { %2745 = vmatprep.mubr.bf16.mxu0 %v2939_v38  ;;  %v3606_v38 = vld [vmem:[%s5253_s1 + $0x250] ss:$8 sps:$4 sm:$0xff]  }
  0x47   :  { %2470 = vmatpush1.bf16.msra.mxu1 %v3482_v12  ;;  %v2926_v12 = vcombine.low %v4275_v32, %v4275_v32  ;;  %v3602_v32 = vld [vmem:[%s5253_s1 + $0x244] ss:$8 sps:$4 sm:$0xff]  }
  0x48   :  { %2716 = vmatpush1.bf16.msra.mxu0 %v3485_v13  ;;  %2471 = vmatprep.subr.bf16.mxu1 %v3490_v14  ;;  %v3574_v13 = vld [vmem:[%s5253_s1 + $0x200] ss:$8 sps:$4 sm:$0xff]   ;;  %v2938_v14 = vcombine.low %v4288_v36, %v4288_v36  ;;  %v3608_v36 = vld [vmem:[%s5253_s1 + $0x254] ss:$8 sps:$4 sm:$0xff]  }
  0x49   :  { %2717 = vmatprep.subr.bf16.mxu0 %v3493_v15  ;;  %v3579_v15 = vld [vmem:[%s5253_s1 + $0x800] ss:$8 sps:$4 sm:$0xff]  }
  0x4b   :  { %2472 = vmatpush1.bf16.msra.mxu1 %v3488_v16  ;;  %v3584_v16 = vld [vmem:[%s5253_s1 + $0x214] ss:$8 sps:$4 sm:$0xff]  }
  0x4c   :  { %2718 = vmatpush1.bf16.msra.mxu0 %v3491_v17  ;;  %2473 = vmatprep.subr.bf16.mxu1 %v3496_v18  ;;  %v3587_v17 = vld [vmem:[%s5253_s1 + $0x814] ss:$8 sps:$4 sm:$0xff]  }
  0x4d   :  { %2719 = vmatprep.subr.bf16.mxu0 %v3499_v19  ;;  %v4425_v18 = vld [vmem:[%s5254_s0 + $0x10] sm:$0xff] }
  0x4e   :  { %v2929_v19 = vcombine.high %v4425_v18, %v4425_v18 }
  0x4f   :  { %2474 = vmatpush1.bf16.msra.mxu1 %v3494_v20  ;;  %v4432_v20 = vld [vmem:[%s5254_s0 + $0x40] sm:$0xff] }
  0x50   :  { %2720 = vmatpush1.bf16.msra.mxu0 %v3497_v21  ;;  %2475 = vmatprep.subr.bf16.mxu1 %v3502_v22  ;;  %v3582_v21 = vld [vmem:[%s5253_s1 + $0x210] ss:$8 sps:$4 sm:$0xff]  }
  0x51   :  { %2721 = vmatprep.subr.bf16.mxu0 %v3505_v23  ;;  %v3585_v22 = vld [vmem:[%s5253_s1 + $0x810] ss:$8 sps:$4 sm:$0xff]   ;;  %v2941_v23 = vcombine.high %v4432_v20, %v4432_v20 }
  0x53   :  { %2476 = vmatpush1.bf16.msra.mxu1 %v3500_v24  ;;  %v3590_v24 = vld [vmem:[%s5253_s1 + $0x224] ss:$8 sps:$4 sm:$0xff]  }
  0x54   :  { %2722 = vmatpush1.bf16.msra.mxu0 %v3503_v25  ;;  %2477 = vmatprep.subr.bf16.mxu1 %v3508_v26  ;;  %v3593_v25 = vld [vmem:[%s5253_s1 + $0x824] ss:$8 sps:$4 sm:$0xff]   ;;  %v3588_v26 = vld [vmem:[%s5253_s1 + $0x220] ss:$8 sps:$4 sm:$0xff]  }
  0x55   :  { %2723 = vmatprep.subr.bf16.mxu0 %v3511_v27  ;;  %v3591_v27 = vld [vmem:[%s5253_s1 + $0x820] ss:$8 sps:$4 sm:$0xff]  }
  0x57   :  { %2478 = vmatpush1.bf16.msra.mxu1 %v3506_v28  ;;  %v3596_v28 = vld [vmem:[%s5253_s1 + $0x234] ss:$8 sps:$4 sm:$0xff]  }
  0x58   :  { %2724 = vmatpush1.bf16.msra.mxu0 %v3509_v29  ;;  %2479 = vmatprep.subr.bf16.mxu1 %v3514_v30  ;;  %v3599_v29 = vld [vmem:[%s5253_s1 + $0x834] ss:$8 sps:$4 sm:$0xff]   ;;  %v3594_v30 = vld [vmem:[%s5253_s1 + $0x230] ss:$8 sps:$4 sm:$0xff]  }
  0x59   :  { %2725 = vmatprep.subr.bf16.mxu0 %v3517_v31  ;;  %v3597_v31 = vld [vmem:[%s5253_s1 + $0x830] ss:$8 sps:$4 sm:$0xff]  }
  0x5b   :  { %2480 = vmatpush1.bf16.msra.mxu1 %v3512_v33  ;;  %v3605_v33 = vld [vmem:[%s5253_s1 + $0x844] ss:$8 sps:$4 sm:$0xff]  }
  0x5c   :  { %2726 = vmatpush1.bf16.msra.mxu0 %v3515_v34  ;;  %2481 = vmatprep.subr.bf16.mxu1 %v3520_v37  ;;  %v3600_v34 = vld [vmem:[%s5253_s1 + $0x240] ss:$8 sps:$4 sm:$0xff]   ;;  %v3611_v37 = vld [vmem:[%s5253_s1 + $0x854] ss:$8 sps:$4 sm:$0xff]  }
  0x5d   :  { %2727 = vmatprep.subr.bf16.mxu0 %v3523_v39  ;;  %v3609_v39 = vld [vmem:[%s5253_s1 + $0x850] ss:$8 sps:$4 sm:$0xff]  }
  0x5f   :  { %2482 = vmatpush1.bf16.msra.mxu1 %v3518_v40  ;;  %v3614_v40 = vld [vmem:[%s5253_s1 + $0x264] ss:$8 sps:$4 sm:$0xff]  }
  0x60   :  { %2728 = vmatpush1.bf16.msra.mxu0 %v3521_v41  ;;  %2483 = vmatprep.subr.bf16.mxu1 %v3526_v42  ;;  %v3617_v41 = vld [vmem:[%s5253_s1 + $0x864] ss:$8 sps:$4 sm:$0xff]   ;;  %v3612_v42 = vld [vmem:[%s5253_s1 + $0x260] ss:$8 sps:$4 sm:$0xff]  }
  0x61   :  { %2729 = vmatprep.subr.bf16.mxu0 %v3529_v43  ;;  %v3615_v43 = vld [vmem:[%s5253_s1 + $0x860] ss:$8 sps:$4 sm:$0xff]  }
  0x63   :  { %2484 = vmatpush1.bf16.msra.mxu1 %v3524_v44  ;;  %v3620_v44 = vld [vmem:[%s5253_s1 + $0x274] ss:$8 sps:$4 sm:$0xff]  }
  0x64   :  { %2730 = vmatpush1.bf16.msra.mxu0 %v3527_v45  ;;  %2485 = vmatprep.subr.bf16.mxu1 %v3532_v46  ;;  %v3623_v45 = vld [vmem:[%s5253_s1 + $0x874] ss:$8 sps:$4 sm:$0xff]   ;;  %v3618_v46 = vld [vmem:[%s5253_s1 + $0x270] ss:$8 sps:$4 sm:$0xff]  }
  0x65   :  { %2731 = vmatprep.subr.bf16.mxu0 %v3535_v47  ;;  %v3621_v47 = vld [vmem:[%s5253_s1 + $0x870] ss:$8 sps:$4 sm:$0xff]  }
  0x67   :  { %2486 = vmatpush1.bf16.msra.mxu1 %v3530_v48  ;;  %v3626_v48 = vld [vmem:[%s5253_s1 + $0x284] ss:$8 sps:$4 sm:$0xff]  }
  0x68   :  { %2732 = vmatpush1.bf16.msra.mxu0 %v3533_v49  ;;  %2487 = vmatprep.subr.bf16.mxu1 %v3538_v50  ;;  %v3629_v49 = vld [vmem:[%s5253_s1 + $0x884] ss:$8 sps:$4 sm:$0xff]   ;;  %v3624_v50 = vld [vmem:[%s5253_s1 + $0x280] ss:$8 sps:$4 sm:$0xff]  }
  0x69   :  { %2733 = vmatprep.subr.bf16.mxu0 %v3541_v51  ;;  %v3627_v51 = vld [vmem:[%s5253_s1 + $0x880] ss:$8 sps:$4 sm:$0xff]  }
  0x6b   :  { %2488 = vmatpush1.bf16.msra.mxu1 %v3536_v52  ;;  %v3632_v52 = vld [vmem:[%s5253_s1 + $0x294] ss:$8 sps:$4 sm:$0xff]  }
  0x6c   :  { %2734 = vmatpush1.bf16.msra.mxu0 %v3539_v53  ;;  %2489 = vmatprep.subr.bf16.mxu1 %v3544_v54  ;;  %v3635_v53 = vld [vmem:[%s5253_s1 + $0x894] ss:$8 sps:$4 sm:$0xff]   ;;  %v3630_v54 = vld [vmem:[%s5253_s1 + $0x290] ss:$8 sps:$4 sm:$0xff]  }
  0x6d   :  { %2735 = vmatprep.subr.bf16.mxu0 %v3547_v55  ;;  %v3633_v55 = vld [vmem:[%s5253_s1 + $0x890] ss:$8 sps:$4 sm:$0xff]  }
  0x6f   :  { %2490 = vmatpush1.bf16.msra.mxu1 %v3542_v56  ;;  %v3638_v56 = vld [vmem:[%s5253_s1 + $0x2a4] ss:$8 sps:$4 sm:$0xff]  }
  0x70   :  { %2736 = vmatpush1.bf16.msra.mxu0 %v3545_v57  ;;  %2491 = vmatprep.subr.bf16.mxu1 %v3550_v58  ;;  %v3641_v57 = vld [vmem:[%s5253_s1 + $0x8a4] ss:$8 sps:$4 sm:$0xff]   ;;  %v3636_v58 = vld [vmem:[%s5253_s1 + $0x2a0] ss:$8 sps:$4 sm:$0xff]  }
  0x71   :  { %2737 = vmatprep.subr.bf16.mxu0 %v3553_v59  ;;  %v3639_v59 = vld [vmem:[%s5253_s1 + $0x8a0] ss:$8 sps:$4 sm:$0xff]  }
  0x73   :  { %2492 = vmatpush1.bf16.msra.mxu1 %v3548_v60  ;;  %v3644_v60 = vld [vmem:[%s5253_s1 + $0x2b4] ss:$8 sps:$4 sm:$0xff]  }
  0x74   :  { %2738 = vmatpush1.bf16.msra.mxu0 %v3551_v61  ;;  %2493 = vmatprep.subr.bf16.mxu1 %v3556_v62  ;;  %v3647_v61 = vld [vmem:[%s5253_s1 + $0x8b4] ss:$8 sps:$4 sm:$0xff]   ;;  %v3642_v62 = vld [vmem:[%s5253_s1 + $0x2b0] ss:$8 sps:$4 sm:$0xff]  }
  0x75   :  { %2739 = vmatprep.subr.bf16.mxu0 %v3559_v63  ;;  %v3645_v63 = vld [vmem:[%s5253_s1 + $0x8b0] ss:$8 sps:$4 sm:$0xff]  }
  0x77   :  { %2494 = vmatpush1.bf16.msra.mxu1 %v3554_v0  ;;  %v3650_v0 = vld [vmem:[%s5253_s1 + $0x2c4] ss:$8 sps:$4 sm:$0xff]  }
  0x78   :  { %2740 = vmatpush1.bf16.msra.mxu0 %v3557_v1  ;;  %2495 = vmatprep.subr.bf16.mxu1 %v3562_v2  ;;  %v3653_v1 = vld [vmem:[%s5253_s1 + $0x8c4] ss:$8 sps:$4 sm:$0xff]   ;;  %v3648_v2 = vld [vmem:[%s5253_s1 + $0x2c0] ss:$8 sps:$4 sm:$0xff]  }
  0x79   :  { %2741 = vmatprep.subr.bf16.mxu0 %v3565_v3  ;;  %v3651_v3 = vld [vmem:[%s5253_s1 + $0x8c0] ss:$8 sps:$4 sm:$0xff]  }
  0x7b   :  { %2496 = vmatpush1.bf16.msra.mxu1 %v3560_v4  ;;  %v3656_v4 = vld [vmem:[%s5253_s1 + $0x2d4] ss:$8 sps:$4 sm:$0xff]  }
  0x7c   :  { %2742 = vmatpush1.bf16.msra.mxu0 %v3563_v5  ;;  %2497 = vmatprep.subr.bf16.mxu1 %v3568_v6  ;;  %v3659_v5 = vld [vmem:[%s5253_s1 + $0x8d4] ss:$8 sps:$4 sm:$0xff]   ;;  %v3654_v6 = vld [vmem:[%s5253_s1 + $0x2d0] ss:$8 sps:$4 sm:$0xff]  }
  0x7d   :  { %2743 = vmatprep.subr.bf16.mxu0 %v3571_v7  ;;  %v3657_v7 = vld [vmem:[%s5253_s1 + $0x8d0] ss:$8 sps:$4 sm:$0xff]  }
  0x7f   :  { %2498 = vmatpush1.bf16.msra.mxu1 %v3566_v8  ;;  %v3662_v8 = vld [vmem:[%s5253_s1 + $0x2e4] ss:$8 sps:$4 sm:$0xff]  }
  0x80   :  { %2744 = vmatpush1.bf16.msra.mxu0 %v3569_v9  ;;  %2508 = vmatprep.subr.bf16.mxu1 %v3576_v10  ;;  %v3665_v9 = vld [vmem:[%s5253_s1 + $0x8e4] ss:$8 sps:$4 sm:$0xff]   ;;  %v3660_v10 = vld [vmem:[%s5253_s1 + $0x2e0] ss:$8 sps:$4 sm:$0xff]  }
  0x81   :  { %2754 = vmatprep.subr.bf16.mxu0 %v3581_v11  ;;  %v3663_v11 = vld [vmem:[%s5253_s1 + $0x8e0] ss:$8 sps:$4 sm:$0xff]  }
  0x82   :  { %2500 = vmatmul.mubr.bf16.vlgmr.msra.gmra.mrb[0].mxu1 %v2926_v12  ;;  %v3668_v12 = vld [vmem:[%s5253_s1 + $0x2f4] ss:$8 sps:$4 sm:$0xff]  }
  0x83   :  { %2746 = vmatmul.mubr.bf16.vlgmr.msra.gmra.mrb[0].mxu0 %v2938_v14  ;;  %2509 = vmatpush1.bf16.msra.mxu1 %v3574_v13  ;;  %v3671_v13 = vld [vmem:[%s5253_s1 + $0x8f4] ss:$8 sps:$4 sm:$0xff]   ;;  %v3666_v14 = vld [vmem:[%s5253_s1 + $0x2f0] ss:$8 sps:$4 sm:$0xff]  }
  0x84   :  { %2755 = vmatpush1.bf16.msra.mxu0 %v3579_v15  ;;  %2510 = vmatprep.subr.bf16.mxu1 %v3584_v16  ;;  %v3669_v15 = vld [vmem:[%s5253_s1 + $0x8f0] ss:$8 sps:$4 sm:$0xff]   ;;  %v3676_v16 = vld [vmem:[%s5253_s1 + $0x304] ss:$8 sps:$4 sm:$0xff]  }
  0x85   :  { %2756 = vmatprep.subr.bf16.mxu0 %v3587_v17  ;;  %2540 = vmatprep.mubr.bf16.mxu1 %v2929_v19  ;;  %v3681_v17 = vld [vmem:[%s5253_s1 + $0x904] ss:$8 sps:$4 sm:$0xff]   ;;  %v3674_v19 = vld [vmem:[%s5253_s1 + $0x300] ss:$8 sps:$4 sm:$0xff]  }
  0x86   :  { %2786 = vmatprep.mubr.bf16.mxu0 %v2941_v23  ;;  %v2940_v23 = vcombine.low %v4432_v20, %v4432_v20 }
  0x87   :  { %2511 = vmatpush1.bf16.msra.mxu1 %v3582_v21  ;;  %v3679_v21 = vld [vmem:[%s5253_s1 + $0x900] ss:$8 sps:$4 sm:$0xff]  }
  0x88   :  { %2757 = vmatpush1.bf16.msra.mxu0 %v3585_v22  ;;  %2512 = vmatprep.subr.bf16.mxu1 %v3590_v24  ;;  %v2928_v22 = vcombine.low %v4425_v18, %v4425_v18  ;;  %v4629_v24 = vld [vmem:[%s5254_s0 + $0x18] sm:$0xff] }
  0x89   :  { %2758 = vmatprep.subr.bf16.mxu0 %v3593_v25  ;;  %v4634_v25 = vld [vmem:[%s5254_s0 + $0x48] sm:$0xff]  ;;  %v3687_v18 = vld [vmem:[%s5253_s1 + $0x914] ss:$8 sps:$4 sm:$0xff]   ;;  %v2931_v20 = vcombine.high %v4629_v24, %v4629_v24 }
  0x8b   :  { %2513 = vmatpush1.bf16.msra.mxu1 %v3588_v26  ;;  %v3684_v26 = vld [vmem:[%s5253_s1 + $0x314] ss:$8 sps:$4 sm:$0xff]  }
  0x8c   :  { %2759 = vmatpush1.bf16.msra.mxu0 %v3591_v27  ;;  %2514 = vmatprep.subr.bf16.mxu1 %v3596_v28  ;;  %v2943_v27 = vcombine.high %v4634_v25, %v4634_v25  ;;  %v3682_v28 = vld [vmem:[%s5253_s1 + $0x310] ss:$8 sps:$4 sm:$0xff]  }
  0x8d   :  { %2760 = vmatprep.subr.bf16.mxu0 %v3599_v29  ;;  %v3685_v29 = vld [vmem:[%s5253_s1 + $0x910] ss:$8 sps:$4 sm:$0xff]  }
  0x8f   :  { %2515 = vmatpush1.bf16.msra.mxu1 %v3594_v30  ;;  %v3690_v30 = vld [vmem:[%s5253_s1 + $0x324] ss:$8 sps:$4 sm:$0xff]  }
  0x90   :  { %2761 = vmatpush1.bf16.msra.mxu0 %v3597_v31  ;;  %2516 = vmatprep.subr.bf16.mxu1 %v3602_v32  ;;  %v3693_v31 = vld [vmem:[%s5253_s1 + $0x924] ss:$8 sps:$4 sm:$0xff]   ;;  %v3688_v32 = vld [vmem:[%s5253_s1 + $0x320] ss:$8 sps:$4 sm:$0xff]  }
  0x91   :  { %2762 = vmatprep.subr.bf16.mxu0 %v3605_v33  ;;  %v3691_v33 = vld [vmem:[%s5253_s1 + $0x920] ss:$8 sps:$4 sm:$0xff]  }
  0x93   :  { %2517 = vmatpush1.bf16.msra.mxu1 %v3600_v34  ;;  %v3696_v34 = vld [vmem:[%s5253_s1 + $0x334] ss:$8 sps:$4 sm:$0xff]  }
  0x94   :  { %2763 = vmatpush1.bf16.msra.mxu0 %v3603_v35  ;;  %2518 = vmatprep.subr.bf16.mxu1 %v3608_v36  ;;  %v3699_v35 = vld [vmem:[%s5253_s1 + $0x934] ss:$8 sps:$4 sm:$0xff]   ;;  %v3694_v36 = vld [vmem:[%s5253_s1 + $0x330] ss:$8 sps:$4 sm:$0xff]  }
  0x95   :  { %2764 = vmatprep.subr.bf16.mxu0 %v3611_v37  ;;  %v3697_v37 = vld [vmem:[%s5253_s1 + $0x930] ss:$8 sps:$4 sm:$0xff]  }
  0x97   :  { %2519 = vmatpush1.bf16.msra.mxu1 %v3606_v38  ;;  %v3702_v38 = vld [vmem:[%s5253_s1 + $0x344] ss:$8 sps:$4 sm:$0xff]  }
  0x98   :  { %2765 = vmatpush1.bf16.msra.mxu0 %v3609_v39  ;;  %2520 = vmatprep.subr.bf16.mxu1 %v3614_v40  ;;  %v3705_v39 = vld [vmem:[%s5253_s1 + $0x944] ss:$8 sps:$4 sm:$0xff]   ;;  %v3700_v40 = vld [vmem:[%s5253_s1 + $0x340] ss:$8 sps:$4 sm:$0xff]  }
  0x99   :  { %2766 = vmatprep.subr.bf16.mxu0 %v3617_v41  ;;  %v3703_v41 = vld [vmem:[%s5253_s1 + $0x940] ss:$8 sps:$4 sm:$0xff]  }
  0x9b   :  { %2521 = vmatpush1.bf16.msra.mxu1 %v3612_v42  ;;  %v3708_v42 = vld [vmem:[%s5253_s1 + $0x354] ss:$8 sps:$4 sm:$0xff]  }
  0x9c   :  { %2767 = vmatpush1.bf16.msra.mxu0 %v3615_v43  ;;  %2522 = vmatprep.subr.bf16.mxu1 %v3620_v44  ;;  %v3711_v43 = vld [vmem:[%s5253_s1 + $0x954] ss:$8 sps:$4 sm:$0xff]   ;;  %v3706_v44 = vld [vmem:[%s5253_s1 + $0x350] ss:$8 sps:$4 sm:$0xff]  }
  0x9d   :  { %2768 = vmatprep.subr.bf16.mxu0 %v3623_v45  ;;  %v3709_v45 = vld [vmem:[%s5253_s1 + $0x950] ss:$8 sps:$4 sm:$0xff]  }
  0x9f   :  { %2523 = vmatpush1.bf16.msra.mxu1 %v3618_v46  ;;  %v3714_v46 = vld [vmem:[%s5253_s1 + $0x364] ss:$8 sps:$4 sm:$0xff]  }
  0xa0   :  { %2769 = vmatpush1.bf16.msra.mxu0 %v3621_v47  ;;  %2524 = vmatprep.subr.bf16.mxu1 %v3626_v48  ;;  %v3717_v47 = vld [vmem:[%s5253_s1 + $0x964] ss:$8 sps:$4 sm:$0xff]   ;;  %v3712_v48 = vld [vmem:[%s5253_s1 + $0x360] ss:$8 sps:$4 sm:$0xff]  }
  0xa1   :  { %2770 = vmatprep.subr.bf16.mxu0 %v3629_v49  ;;  %v3715_v49 = vld [vmem:[%s5253_s1 + $0x960] ss:$8 sps:$4 sm:$0xff]  }
  0xa3   :  { %2525 = vmatpush1.bf16.msra.mxu1 %v3624_v50  ;;  %v3720_v50 = vld [vmem:[%s5253_s1 + $0x374] ss:$8 sps:$4 sm:$0xff]  }
  0xa4   :  { %2771 = vmatpush1.bf16.msra.mxu0 %v3627_v51  ;;  %2526 = vmatprep.subr.bf16.mxu1 %v3632_v52  ;;  %v3723_v51 = vld [vmem:[%s5253_s1 + $0x974] ss:$8 sps:$4 sm:$0xff]   ;;  %v3718_v52 = vld [vmem:[%s5253_s1 + $0x370] ss:$8 sps:$4 sm:$0xff]  }
  0xa5   :  { %2772 = vmatprep.subr.bf16.mxu0 %v3635_v53  ;;  %v3721_v53 = vld [vmem:[%s5253_s1 + $0x970] ss:$8 sps:$4 sm:$0xff]  }
  0xa7   :  { %2527 = vmatpush1.bf16.msra.mxu1 %v3630_v54  ;;  %v3726_v54 = vld [vmem:[%s5253_s1 + $0x384] ss:$8 sps:$4 sm:$0xff]  }
  0xa8   :  { %2773 = vmatpush1.bf16.msra.mxu0 %v3633_v55  ;;  %2528 = vmatprep.subr.bf16.mxu1 %v3638_v56  ;;  %v3729_v55 = vld [vmem:[%s5253_s1 + $0x984] ss:$8 sps:$4 sm:$0xff]   ;;  %v3724_v56 = vld [vmem:[%s5253_s1 + $0x380] ss:$8 sps:$4 sm:$0xff]  }
  0xa9   :  { %2774 = vmatprep.subr.bf16.mxu0 %v3641_v57  ;;  %v3727_v57 = vld [vmem:[%s5253_s1 + $0x980] ss:$8 sps:$4 sm:$0xff]  }
  0xab   :  { %2529 = vmatpush1.bf16.msra.mxu1 %v3636_v58  ;;  %v3732_v58 = vld [vmem:[%s5253_s1 + $0x394] ss:$8 sps:$4 sm:$0xff]  }
  0xac   :  { %2775 = vmatpush1.bf16.msra.mxu0 %v3639_v59  ;;  %2530 = vmatprep.subr.bf16.mxu1 %v3644_v60  ;;  %v3735_v59 = vld [vmem:[%s5253_s1 + $0x994] ss:$8 sps:$4 sm:$0xff]   ;;  %v3730_v60 = vld [vmem:[%s5253_s1 + $0x390] ss:$8 sps:$4 sm:$0xff]  }
  0xad   :  { %2776 = vmatprep.subr.bf16.mxu0 %v3647_v61  ;;  %v3733_v61 = vld [vmem:[%s5253_s1 + $0x990] ss:$8 sps:$4 sm:$0xff]  }
  0xaf   :  { %2531 = vmatpush1.bf16.msra.mxu1 %v3642_v62  ;;  %v3738_v62 = vld [vmem:[%s5253_s1 + $0x3a4] ss:$8 sps:$4 sm:$0xff]  }
  0xb0   :  { %2777 = vmatpush1.bf16.msra.mxu0 %v3645_v63  ;;  %2532 = vmatprep.subr.bf16.mxu1 %v3650_v0  ;;  %v3741_v63 = vld [vmem:[%s5253_s1 + $0x9a4] ss:$8 sps:$4 sm:$0xff]   ;;  %v3736_v0 = vld [vmem:[%s5253_s1 + $0x3a0] ss:$8 sps:$4 sm:$0xff]  }
  0xb1   :  { %2778 = vmatprep.subr.bf16.mxu0 %v3653_v1  ;;  %v3739_v1 = vld [vmem:[%s5253_s1 + $0x9a0] ss:$8 sps:$4 sm:$0xff]  }
  0xb3   :  { %2533 = vmatpush1.bf16.msra.mxu1 %v3648_v2  ;;  %v3744_v2 = vld [vmem:[%s5253_s1 + $0x3b4] ss:$8 sps:$4 sm:$0xff]  }
  0xb4   :  { %2779 = vmatpush1.bf16.msra.mxu0 %v3651_v3  ;;  %2534 = vmatprep.subr.bf16.mxu1 %v3656_v4  ;;  %v3747_v3 = vld [vmem:[%s5253_s1 + $0x9b4] ss:$8 sps:$4 sm:$0xff]   ;;  %v3742_v4 = vld [vmem:[%s5253_s1 + $0x3b0] ss:$8 sps:$4 sm:$0xff]  }
  0xb5   :  { %2780 = vmatprep.subr.bf16.mxu0 %v3659_v5  ;;  %v3745_v5 = vld [vmem:[%s5253_s1 + $0x9b0] ss:$8 sps:$4 sm:$0xff]  }
  0xb7   :  { %2535 = vmatpush1.bf16.msra.mxu1 %v3654_v6  ;;  %v3750_v6 = vld [vmem:[%s5253_s1 + $0x3c4] ss:$8 sps:$4 sm:$0xff]  }
  0xb8   :  { %2781 = vmatpush1.bf16.msra.mxu0 %v3657_v7  ;;  %2536 = vmatprep.subr.bf16.mxu1 %v3662_v8  ;;  %v3753_v7 = vld [vmem:[%s5253_s1 + $0x9c4] ss:$8 sps:$4 sm:$0xff]   ;;  %v3748_v8 = vld [vmem:[%s5253_s1 + $0x3c0] ss:$8 sps:$4 sm:$0xff]  }
  0xb9   :  { %2782 = vmatprep.subr.bf16.mxu0 %v3665_v9  ;;  %v3751_v9 = vld [vmem:[%s5253_s1 + $0x9c0] ss:$8 sps:$4 sm:$0xff]  }
  0xbb   :  { %2537 = vmatpush1.bf16.msra.mxu1 %v3660_v10  ;;  %v3756_v10 = vld [vmem:[%s5253_s1 + $0x3d4] ss:$8 sps:$4 sm:$0xff]  }
  0xbc   :  { %2783 = vmatpush1.bf16.msra.mxu0 %v3663_v11  ;;  %2538 = vmatprep.subr.bf16.mxu1 %v3668_v12  ;;  %v3759_v11 = vld [vmem:[%s5253_s1 + $0x9d4] ss:$8 sps:$4 sm:$0xff]   ;;  %v3754_v12 = vld [vmem:[%s5253_s1 + $0x3d0] ss:$8 sps:$4 sm:$0xff]  }
  0xbd   :  { %2784 = vmatprep.subr.bf16.mxu0 %v3671_v13  ;;  %v3757_v13 = vld [vmem:[%s5253_s1 + $0x9d0] ss:$8 sps:$4 sm:$0xff]  }
  0xbf   :  { %2539 = vmatpush1.bf16.msra.mxu1 %v3666_v14  ;;  %v3762_v14 = vld [vmem:[%s5253_s1 + $0x3e4] ss:$8 sps:$4 sm:$0xff]  }
  0xc0   :  { %2785 = vmatpush1.bf16.msra.mxu0 %v3669_v15  ;;  %2549 = vmatprep.subr.bf16.mxu1 %v3676_v16  ;;  %v3765_v15 = vld [vmem:[%s5253_s1 + $0x9e4] ss:$8 sps:$4 sm:$0xff]   ;;  %v3760_v16 = vld [vmem:[%s5253_s1 + $0x3e0] ss:$8 sps:$4 sm:$0xff]  }
  0xc1   :  { %2795 = vmatprep.subr.bf16.mxu0 %v3681_v17  ;;  %v3763_v17 = vld [vmem:[%s5253_s1 + $0x9e0] ss:$8 sps:$4 sm:$0xff]  }
  0xc2   :  { %2541 = vmatmul.mubr.bf16.vlgmr.msra.gmra.mrb[0].mxu1 %v2928_v22  ;;  %v3766_v22 = vld [vmem:[%s5253_s1 + $0x3f0] ss:$8 sps:$4 sm:$0xff]  }
  0xc3   :  { %2787 = vmatmul.mubr.bf16.vlgmr.msra.gmra.mrb[0].mxu0 %v2940_v23  ;;  %2550 = vmatpush1.bf16.msra.mxu1 %v3674_v19  ;;  %v3768_v19 = vld [vmem:[%s5253_s1 + $0x3f4] ss:$8 sps:$4 sm:$0xff]   ;;  %v3769_v23 = vld [vmem:[%s5253_s1 + $0x9f0] ss:$8 sps:$4 sm:$0xff]  }
  0xc4   :  { %2796 = vmatpush1.bf16.msra.mxu0 %v3679_v21  ;;  %2551 = vmatprep.subr.bf16.mxu1 %v3684_v26  ;;  %v3771_v21 = vld [vmem:[%s5253_s1 + $0x9f4] ss:$8 sps:$4 sm:$0xff]   ;;  %v3776_v26 = vld [vmem:[%s5253_s1 + $0x404] ss:$8 sps:$4 sm:$0xff]  }
  0xc5   :  { %2797 = vmatprep.subr.bf16.mxu0 %v3687_v18  ;;  %2581 = vmatprep.mubr.bf16.mxu1 %v2931_v20  ;;  %v3781_v18 = vld [vmem:[%s5253_s1 + $0xa04] ss:$8 sps:$4 sm:$0xff]  }
  0xc6   :  { %2827 = vmatprep.mubr.bf16.mxu0 %v2943_v27  ;;  %v4829_v20 = vld [vmem:[%s5254_s0 + $0x20] sm:$0xff]  ;;  %v2930_v27 = vcombine.low %v4629_v24, %v4629_v24  ;;  %v3784_v24 = vld [vmem:[%s5253_s1 + $0x414] ss:$8 sps:$4 sm:$0xff]  }
  0xc7   :  { %2552 = vmatpush1.bf16.msra.mxu1 %v3682_v28  ;;  %v2942_v28 = vcombine.low %v4634_v25, %v4634_v25  ;;  %v3787_v25 = vld [vmem:[%s5253_s1 + $0xa14] ss:$8 sps:$4 sm:$0xff]  }
  0xc8   :  { %2798 = vmatpush1.bf16.msra.mxu0 %v3685_v29  ;;  %2553 = vmatprep.subr.bf16.mxu1 %v3690_v30  ;;  %v4838_v29 = vld [vmem:[%s5254_s0 + $0x50] sm:$0xff]  ;;  %v3774_v30 = vld [vmem:[%s5253_s1 + $0x400] ss:$8 sps:$4 sm:$0xff]  }
  0xc9   :  { %2799 = vmatprep.subr.bf16.mxu0 %v3693_v31  ;;  %v3779_v31 = vld [vmem:[%s5253_s1 + $0xa00] ss:$8 sps:$4 sm:$0xff]  }
  0xcb   :  { %2554 = vmatpush1.bf16.msra.mxu1 %v3688_v32  ;;  %v2933_v32 = vcombine.high %v4829_v20, %v4829_v20 }
  0xcc   :  { %2800 = vmatpush1.bf16.msra.mxu0 %v3691_v33  ;;  %2555 = vmatprep.subr.bf16.mxu1 %v3696_v34  ;;  %v2945_v33 = vcombine.high %v4838_v29, %v4838_v29  ;;  %v3782_v34 = vld [vmem:[%s5253_s1 + $0x410] ss:$8 sps:$4 sm:$0xff]  }
  0xcd   :  { %2801 = vmatprep.subr.bf16.mxu0 %v3699_v35  ;;  %v3785_v35 = vld [vmem:[%s5253_s1 + $0xa10] ss:$8 sps:$4 sm:$0xff]  }
  0xcf   :  { %2556 = vmatpush1.bf16.msra.mxu1 %v3694_v36  ;;  %v3790_v36 = vld [vmem:[%s5253_s1 + $0x424] ss:$8 sps:$4 sm:$0xff]  }
  0xd0   :  { %2802 = vmatpush1.bf16.msra.mxu0 %v3697_v37  ;;  %2557 = vmatprep.subr.bf16.mxu1 %v3702_v38  ;;  %v3793_v37 = vld [vmem:[%s5253_s1 + $0xa24] ss:$8 sps:$4 sm:$0xff]   ;;  %v3788_v38 = vld [vmem:[%s5253_s1 + $0x420] ss:$8 sps:$4 sm:$0xff]  }
  0xd1   :  { %2803 = vmatprep.subr.bf16.mxu0 %v3705_v39  ;;  %v3791_v39 = vld [vmem:[%s5253_s1 + $0xa20] ss:$8 sps:$4 sm:$0xff]  }
  0xd3   :  { %2558 = vmatpush1.bf16.msra.mxu1 %v3700_v40  ;;  %v3796_v40 = vld [vmem:[%s5253_s1 + $0x434] ss:$8 sps:$4 sm:$0xff]  }
  0xd4   :  { %2804 = vmatpush1.bf16.msra.mxu0 %v3703_v41  ;;  %2559 = vmatprep.subr.bf16.mxu1 %v3708_v42  ;;  %v3799_v41 = vld [vmem:[%s5253_s1 + $0xa34] ss:$8 sps:$4 sm:$0xff]   ;;  %v3794_v42 = vld [vmem:[%s5253_s1 + $0x430] ss:$8 sps:$4 sm:$0xff]  }
  0xd5   :  { %2805 = vmatprep.subr.bf16.mxu0 %v3711_v43  ;;  %v3797_v43 = vld [vmem:[%s5253_s1 + $0xa30] ss:$8 sps:$4 sm:$0xff]  }
  0xd7   :  { %2560 = vmatpush1.bf16.msra.mxu1 %v3706_v44  ;;  %v3802_v44 = vld [vmem:[%s5253_s1 + $0x444] ss:$8 sps:$4 sm:$0xff]  }
  0xd8   :  { %2806 = vmatpush1.bf16.msra.mxu0 %v3709_v45  ;;  %2561 = vmatprep.subr.bf16.mxu1 %v3714_v46  ;;  %v3805_v45 = vld [vmem:[%s5253_s1 + $0xa44] ss:$8 sps:$4 sm:$0xff]   ;;  %v3800_v46 = vld [vmem:[%s5253_s1 + $0x440] ss:$8 sps:$4 sm:$0xff]  }
  0xd9   :  { %2807 = vmatprep.subr.bf16.mxu0 %v3717_v47  ;;  %v3803_v47 = vld [vmem:[%s5253_s1 + $0xa40] ss:$8 sps:$4 sm:$0xff]  }
  0xdb   :  { %2562 = vmatpush1.bf16.msra.mxu1 %v3712_v48  ;;  %v3808_v48 = vld [vmem:[%s5253_s1 + $0x454] ss:$8 sps:$4 sm:$0xff]  }
  0xdc   :  { %2808 = vmatpush1.bf16.msra.mxu0 %v3715_v49  ;;  %2563 = vmatprep.subr.bf16.mxu1 %v3720_v50  ;;  %v3811_v49 = vld [vmem:[%s5253_s1 + $0xa54] ss:$8 sps:$4 sm:$0xff]   ;;  %v3806_v50 = vld [vmem:[%s5253_s1 + $0x450] ss:$8 sps:$4 sm:$0xff]  }
  0xdd   :  { %2809 = vmatprep.subr.bf16.mxu0 %v3723_v51  ;;  %v3809_v51 = vld [vmem:[%s5253_s1 + $0xa50] ss:$8 sps:$4 sm:$0xff]  }
  0xdf   :  { %2564 = vmatpush1.bf16.msra.mxu1 %v3718_v52  ;;  %v3814_v52 = vld [vmem:[%s5253_s1 + $0x464] ss:$8 sps:$4 sm:$0xff]  }
  0xe0   :  { %2810 = vmatpush1.bf16.msra.mxu0 %v3721_v53  ;;  %2565 = vmatprep.subr.bf16.mxu1 %v3726_v54  ;;  %v3817_v53 = vld [vmem:[%s5253_s1 + $0xa64] ss:$8 sps:$4 sm:$0xff]   ;;  %v3812_v54 = vld [vmem:[%s5253_s1 + $0x460] ss:$8 sps:$4 sm:$0xff]  }
  0xe1   :  { %2811 = vmatprep.subr.bf16.mxu0 %v3729_v55  ;;  %v3815_v55 = vld [vmem:[%s5253_s1 + $0xa60] ss:$8 sps:$4 sm:$0xff]  }
  0xe3   :  { %2566 = vmatpush1.bf16.msra.mxu1 %v3724_v56  ;;  %v3820_v56 = vld [vmem:[%s5253_s1 + $0x474] ss:$8 sps:$4 sm:$0xff]  }
  0xe4   :  { %2812 = vmatpush1.bf16.msra.mxu0 %v3727_v57  ;;  %2567 = vmatprep.subr.bf16.mxu1 %v3732_v58  ;;  %v3823_v57 = vld [vmem:[%s5253_s1 + $0xa74] ss:$8 sps:$4 sm:$0xff]   ;;  %v3818_v58 = vld [vmem:[%s5253_s1 + $0x470] ss:$8 sps:$4 sm:$0xff]  }
  0xe5   :  { %2813 = vmatprep.subr.bf16.mxu0 %v3735_v59  ;;  %v3821_v59 = vld [vmem:[%s5253_s1 + $0xa70] ss:$8 sps:$4 sm:$0xff]  }
  0xe7   :  { %2568 = vmatpush1.bf16.msra.mxu1 %v3730_v60  ;;  %v3826_v60 = vld [vmem:[%s5253_s1 + $0x484] ss:$8 sps:$4 sm:$0xff]  }
  0xe8   :  { %2814 = vmatpush1.bf16.msra.mxu0 %v3733_v61  ;;  %2569 = vmatprep.subr.bf16.mxu1 %v3738_v62  ;;  %v3829_v61 = vld [vmem:[%s5253_s1 + $0xa84] ss:$8 sps:$4 sm:$0xff]   ;;  %v3824_v62 = vld [vmem:[%s5253_s1 + $0x480] ss:$8 sps:$4 sm:$0xff]  }
  0xe9   :  { %2815 = vmatprep.subr.bf16.mxu0 %v3741_v63  ;;  %v3827_v63 = vld [vmem:[%s5253_s1 + $0xa80] ss:$8 sps:$4 sm:$0xff]  }
  0xeb   :  { %2570 = vmatpush1.bf16.msra.mxu1 %v3736_v0  ;;  %v3832_v0 = vld [vmem:[%s5253_s1 + $0x494] ss:$8 sps:$4 sm:$0xff]  }
  0xec   :  { %2816 = vmatpush1.bf16.msra.mxu0 %v3739_v1  ;;  %2571 = vmatprep.subr.bf16.mxu1 %v3744_v2  ;;  %v3835_v1 = vld [vmem:[%s5253_s1 + $0xa94] ss:$8 sps:$4 sm:$0xff]   ;;  %v3830_v2 = vld [vmem:[%s5253_s1 + $0x490] ss:$8 sps:$4 sm:$0xff]  }
  0xed   :  { %2817 = vmatprep.subr.bf16.mxu0 %v3747_v3  ;;  %v3833_v3 = vld [vmem:[%s5253_s1 + $0xa90] ss:$8 sps:$4 sm:$0xff]  }
  0xef   :  { %2572 = vmatpush1.bf16.msra.mxu1 %v3742_v4  ;;  %v3838_v4 = vld [vmem:[%s5253_s1 + $0x4a4] ss:$8 sps:$4 sm:$0xff]  }
  0xf0   :  { %2818 = vmatpush1.bf16.msra.mxu0 %v3745_v5  ;;  %2573 = vmatprep.subr.bf16.mxu1 %v3750_v6  ;;  %v3841_v5 = vld [vmem:[%s5253_s1 + $0xaa4] ss:$8 sps:$4 sm:$0xff]   ;;  %v3836_v6 = vld [vmem:[%s5253_s1 + $0x4a0] ss:$8 sps:$4 sm:$0xff]  }
  0xf1   :  { %2819 = vmatprep.subr.bf16.mxu0 %v3753_v7  ;;  %v3839_v7 = vld [vmem:[%s5253_s1 + $0xaa0] ss:$8 sps:$4 sm:$0xff]  }
  0xf3   :  { %2574 = vmatpush1.bf16.msra.mxu1 %v3748_v8  ;;  %v3844_v8 = vld [vmem:[%s5253_s1 + $0x4b4] ss:$8 sps:$4 sm:$0xff]  }
  0xf4   :  { %2820 = vmatpush1.bf16.msra.mxu0 %v3751_v9  ;;  %2575 = vmatprep.subr.bf16.mxu1 %v3756_v10  ;;  %v3847_v9 = vld [vmem:[%s5253_s1 + $0xab4] ss:$8 sps:$4 sm:$0xff]   ;;  %v3842_v10 = vld [vmem:[%s5253_s1 + $0x4b0] ss:$8 sps:$4 sm:$0xff]  }
  0xf5   :  { %2821 = vmatprep.subr.bf16.mxu0 %v3759_v11  ;;  %v3845_v11 = vld [vmem:[%s5253_s1 + $0xab0] ss:$8 sps:$4 sm:$0xff]  }
  0xf7   :  { %2576 = vmatpush1.bf16.msra.mxu1 %v3754_v12  ;;  %v3850_v12 = vld [vmem:[%s5253_s1 + $0x4c4] ss:$8 sps:$4 sm:$0xff]  }
  0xf8   :  { %2822 = vmatpush1.bf16.msra.mxu0 %v3757_v13  ;;  %2577 = vmatprep.subr.bf16.mxu1 %v3762_v14  ;;  %v3853_v13 = vld [vmem:[%s5253_s1 + $0xac4] ss:$8 sps:$4 sm:$0xff]   ;;  %v3848_v14 = vld [vmem:[%s5253_s1 + $0x4c0] ss:$8 sps:$4 sm:$0xff]  }
  0xf9   :  { %2823 = vmatprep.subr.bf16.mxu0 %v3765_v15  ;;  %v3851_v15 = vld [vmem:[%s5253_s1 + $0xac0] ss:$8 sps:$4 sm:$0xff]  }
  0xfb   :  { %2578 = vmatpush1.bf16.msra.mxu1 %v3760_v16  ;;  %v3856_v16 = vld [vmem:[%s5253_s1 + $0x4d4] ss:$8 sps:$4 sm:$0xff]  }
  0xfc   :  { %2824 = vmatpush1.bf16.msra.mxu0 %v3763_v17  ;;  %2579 = vmatprep.subr.bf16.mxu1 %v3768_v19  ;;  %v3859_v17 = vld [vmem:[%s5253_s1 + $0xad4] ss:$8 sps:$4 sm:$0xff]   ;;  %v3854_v19 = vld [vmem:[%s5253_s1 + $0x4d0] ss:$8 sps:$4 sm:$0xff]  }
  0xfd   :  { %2825 = vmatprep.subr.bf16.mxu0 %v3771_v21  ;;  %v3857_v21 = vld [vmem:[%s5253_s1 + $0xad0] ss:$8 sps:$4 sm:$0xff]  }
  0xff   :  { %2580 = vmatpush1.bf16.msra.mxu1 %v3766_v22  ;;  %v3862_v22 = vld [vmem:[%s5253_s1 + $0x4e4] ss:$8 sps:$4 sm:$0xff]  }
 0x100   :  { %2826 = vmatpush1.bf16.msra.mxu0 %v3769_v23  ;;  %2590 = vmatprep.subr.bf16.mxu1 %v3776_v26  ;;  %v3865_v23 = vld [vmem:[%s5253_s1 + $0xae4] ss:$8 sps:$4 sm:$0xff]   ;;  %v3860_v26 = vld [vmem:[%s5253_s1 + $0x4e0] ss:$8 sps:$4 sm:$0xff]  }
 0x101   :  { %2836 = vmatprep.subr.bf16.mxu0 %v3781_v18  ;;  %v3863_v18 = vld [vmem:[%s5253_s1 + $0xae0] ss:$8 sps:$4 sm:$0xff]  }
 0x102   :  { %2582 = vmatmul.mubr.bf16.vlgmr.msra.gmra.mrb[0].mxu1 %v2930_v27  ;;  %v3868_v27 = vld [vmem:[%s5253_s1 + $0x4f4] ss:$8 sps:$4 sm:$0xff]  }
 0x103   :  { %2828 = vmatmul.mubr.bf16.vlgmr.msra.gmra.mrb[0].mxu0 %v2942_v28  ;;  %2591 = vmatpush1.bf16.msra.mxu1 %v3774_v30  ;;  %v3871_v28 = vld [vmem:[%s5253_s1 + $0xaf4] ss:$8 sps:$4 sm:$0xff]   ;;  %v3866_v30 = vld [vmem:[%s5253_s1 + $0x4f0] ss:$8 sps:$4 sm:$0xff]  }
 0x104   :  { %2837 = vmatpush1.bf16.msra.mxu0 %v3779_v31  ;;  %2592 = vmatprep.subr.bf16.mxu1 %v3784_v24  ;;  %v3869_v31 = vld [vmem:[%s5253_s1 + $0xaf0] ss:$8 sps:$4 sm:$0xff]   ;;  %v3876_v24 = vld [vmem:[%s5253_s1 + $0x504] ss:$8 sps:$4 sm:$0xff]  }
 0x105   :  { %2838 = vmatprep.subr.bf16.mxu0 %v3787_v25  ;;  %2622 = vmatprep.mubr.bf16.mxu1 %v2933_v32  ;;  %v3881_v25 = vld [vmem:[%s5253_s1 + $0xb04] ss:$8 sps:$4 sm:$0xff]   ;;  %v2932_v32 = vcombine.low %v4829_v20, %v4829_v20  ;;  %v3879_v20 = vld [vmem:[%s5253_s1 + $0xb00] ss:$8 sps:$4 sm:$0xff]  }
 0x106   :  { %2868 = vmatprep.mubr.bf16.mxu0 %v2945_v33  ;;  %v2944_v33 = vcombine.low %v4838_v29, %v4838_v29  ;;  %v3884_v29 = vld [vmem:[%s5253_s1 + $0x514] ss:$8 sps:$4 sm:$0xff]  }
 0x107   :  { %2593 = vmatpush1.bf16.msra.mxu1 %v3782_v34  ;;  %v5043_v34 = vld [vmem:[%s5254_s0 + $0x28] sm:$0xff] }
 0x108   :  { %2839 = vmatpush1.bf16.msra.mxu0 %v3785_v35  ;;  %2594 = vmatprep.subr.bf16.mxu1 %v3790_v36  ;;  %v5048_v35 = vld [vmem:[%s5254_s0 + $0x58] sm:$0xff]  ;;  %v3874_v36 = vld [vmem:[%s5253_s1 + $0x500] ss:$8 sps:$4 sm:$0xff]  }
 0x109   :  { %2840 = vmatprep.subr.bf16.mxu0 %v3793_v37  ;;  %v3887_v37 = vld [vmem:[%s5253_s1 + $0xb14] ss:$8 sps:$4 sm:$0xff]  }
 0x10b   :  { %2595 = vmatpush1.bf16.msra.mxu1 %v3788_v38  ;;  %v2935_v38 = vcombine.high %v5043_v34, %v5043_v34 }
 0x10c   :  { %2841 = vmatpush1.bf16.msra.mxu0 %v3791_v39  ;;  %2596 = vmatprep.subr.bf16.mxu1 %v3796_v40  ;;  %v2947_v39 = vcombine.high %v5048_v35, %v5048_v35  ;;  %v3882_v40 = vld [vmem:[%s5253_s1 + $0x510] ss:$8 sps:$4 sm:$0xff]  }
 0x10d   :  { %2842 = vmatprep.subr.bf16.mxu0 %v3799_v41  ;;  %v3885_v41 = vld [vmem:[%s5253_s1 + $0xb10] ss:$8 sps:$4 sm:$0xff]  }
 0x10f   :  { %2597 = vmatpush1.bf16.msra.mxu1 %v3794_v42  ;;  %v3890_v42 = vld [vmem:[%s5253_s1 + $0x524] ss:$8 sps:$4 sm:$0xff]  }
 0x110   :  { %2843 = vmatpush1.bf16.msra.mxu0 %v3797_v43  ;;  %2598 = vmatprep.subr.bf16.mxu1 %v3802_v44  ;;  %v3893_v43 = vld [vmem:[%s5253_s1 + $0xb24] ss:$8 sps:$4 sm:$0xff]   ;;  %v3888_v44 = vld [vmem:[%s5253_s1 + $0x520] ss:$8 sps:$4 sm:$0xff]  }
 0x111   :  { %2844 = vmatprep.subr.bf16.mxu0 %v3805_v45  ;;  %v3891_v45 = vld [vmem:[%s5253_s1 + $0xb20] ss:$8 sps:$4 sm:$0xff]  }
 0x113   :  { %2599 = vmatpush1.bf16.msra.mxu1 %v3800_v46  ;;  %v3896_v46 = vld [vmem:[%s5253_s1 + $0x534] ss:$8 sps:$4 sm:$0xff]  }
 0x114   :  { %2845 = vmatpush1.bf16.msra.mxu0 %v3803_v47  ;;  %2600 = vmatprep.subr.bf16.mxu1 %v3808_v48  ;;  %v3899_v47 = vld [vmem:[%s5253_s1 + $0xb34] ss:$8 sps:$4 sm:$0xff]   ;;  %v3894_v48 = vld [vmem:[%s5253_s1 + $0x530] ss:$8 sps:$4 sm:$0xff]  }
 0x115   :  { %2846 = vmatprep.subr.bf16.mxu0 %v3811_v49  ;;  %v3897_v49 = vld [vmem:[%s5253_s1 + $0xb30] ss:$8 sps:$4 sm:$0xff]  }
 0x117   :  { %2601 = vmatpush1.bf16.msra.mxu1 %v3806_v50  ;;  %v3902_v50 = vld [vmem:[%s5253_s1 + $0x544] ss:$8 sps:$4 sm:$0xff]  }
 0x118   :  { %2847 = vmatpush1.bf16.msra.mxu0 %v3809_v51  ;;  %2602 = vmatprep.subr.bf16.mxu1 %v3814_v52  ;;  %v3905_v51 = vld [vmem:[%s5253_s1 + $0xb44] ss:$8 sps:$4 sm:$0xff]   ;;  %v3900_v52 = vld [vmem:[%s5253_s1 + $0x540] ss:$8 sps:$4 sm:$0xff]  }
 0x119   :  { %2848 = vmatprep.subr.bf16.mxu0 %v3817_v53  ;;  %v3903_v53 = vld [vmem:[%s5253_s1 + $0xb40] ss:$8 sps:$4 sm:$0xff]  }
 0x11b   :  { %2603 = vmatpush1.bf16.msra.mxu1 %v3812_v54  ;;  %v3908_v54 = vld [vmem:[%s5253_s1 + $0x554] ss:$8 sps:$4 sm:$0xff]  }
 0x11c   :  { %2849 = vmatpush1.bf16.msra.mxu0 %v3815_v55  ;;  %2604 = vmatprep.subr.bf16.mxu1 %v3820_v56  ;;  %v3911_v55 = vld [vmem:[%s5253_s1 + $0xb54] ss:$8 sps:$4 sm:$0xff]   ;;  %v3906_v56 = vld [vmem:[%s5253_s1 + $0x550] ss:$8 sps:$4 sm:$0xff]  }
 0x11d   :  { %2850 = vmatprep.subr.bf16.mxu0 %v3823_v57  ;;  %v3909_v57 = vld [vmem:[%s5253_s1 + $0xb50] ss:$8 sps:$4 sm:$0xff]  }
 0x11f   :  { %2605 = vmatpush1.bf16.msra.mxu1 %v3818_v58  ;;  %v3914_v58 = vld [vmem:[%s5253_s1 + $0x564] ss:$8 sps:$4 sm:$0xff]  }
 0x120   :  { %2851 = vmatpush1.bf16.msra.mxu0 %v3821_v59  ;;  %2606 = vmatprep.subr.bf16.mxu1 %v3826_v60  ;;  %v3917_v59 = vld [vmem:[%s5253_s1 + $0xb64] ss:$8 sps:$4 sm:$0xff]   ;;  %v3912_v60 = vld [vmem:[%s5253_s1 + $0x560] ss:$8 sps:$4 sm:$0xff]  }
 0x121   :  { %2852 = vmatprep.subr.bf16.mxu0 %v3829_v61  ;;  %v3915_v61 = vld [vmem:[%s5253_s1 + $0xb60] ss:$8 sps:$4 sm:$0xff]  }
 0x123   :  { %2607 = vmatpush1.bf16.msra.mxu1 %v3824_v62  ;;  %v3920_v62 = vld [vmem:[%s5253_s1 + $0x574] ss:$8 sps:$4 sm:$0xff]  }
 0x124   :  { %2853 = vmatpush1.bf16.msra.mxu0 %v3827_v63  ;;  %2608 = vmatprep.subr.bf16.mxu1 %v3832_v0  ;;  %v3923_v63 = vld [vmem:[%s5253_s1 + $0xb74] ss:$8 sps:$4 sm:$0xff]   ;;  %v3918_v0 = vld [vmem:[%s5253_s1 + $0x570] ss:$8 sps:$4 sm:$0xff]  }
 0x125   :  { %2854 = vmatprep.subr.bf16.mxu0 %v3835_v1  ;;  %v3921_v1 = vld [vmem:[%s5253_s1 + $0xb70] ss:$8 sps:$4 sm:$0xff]  }
 0x127   :  { %2609 = vmatpush1.bf16.msra.mxu1 %v3830_v2  ;;  %v3926_v2 = vld [vmem:[%s5253_s1 + $0x584] ss:$8 sps:$4 sm:$0xff]  }
 0x128   :  { %2855 = vmatpush1.bf16.msra.mxu0 %v3833_v3  ;;  %2610 = vmatprep.subr.bf16.mxu1 %v3838_v4  ;;  %v3929_v3 = vld [vmem:[%s5253_s1 + $0xb84] ss:$8 sps:$4 sm:$0xff]   ;;  %v3924_v4 = vld [vmem:[%s5253_s1 + $0x580] ss:$8 sps:$4 sm:$0xff]  }
 0x129   :  { %2856 = vmatprep.subr.bf16.mxu0 %v3841_v5  ;;  %v3927_v5 = vld [vmem:[%s5253_s1 + $0xb80] ss:$8 sps:$4 sm:$0xff]  }
 0x12b   :  { %2611 = vmatpush1.bf16.msra.mxu1 %v3836_v6  ;;  %v3932_v6 = vld [vmem:[%s5253_s1 + $0x594] ss:$8 sps:$4 sm:$0xff]  }
 0x12c   :  { %2857 = vmatpush1.bf16.msra.mxu0 %v3839_v7  ;;  %2612 = vmatprep.subr.bf16.mxu1 %v3844_v8  ;;  %v3935_v7 = vld [vmem:[%s5253_s1 + $0xb94] ss:$8 sps:$4 sm:$0xff]   ;;  %v3930_v8 = vld [vmem:[%s5253_s1 + $0x590] ss:$8 sps:$4 sm:$0xff]  }
 0x12d   :  { %2858 = vmatprep.subr.bf16.mxu0 %v3847_v9  ;;  %v3933_v9 = vld [vmem:[%s5253_s1 + $0xb90] ss:$8 sps:$4 sm:$0xff]  }
 0x12f   :  { %2613 = vmatpush1.bf16.msra.mxu1 %v3842_v10  ;;  %v3938_v10 = vld [vmem:[%s5253_s1 + $0x5a4] ss:$8 sps:$4 sm:$0xff]  }
 0x130   :  { %2859 = vmatpush1.bf16.msra.mxu0 %v3845_v11  ;;  %2614 = vmatprep.subr.bf16.mxu1 %v3850_v12  ;;  %v3941_v11 = vld [vmem:[%s5253_s1 + $0xba4] ss:$8 sps:$4 sm:$0xff]   ;;  %v3936_v12 = vld [vmem:[%s5253_s1 + $0x5a0] ss:$8 sps:$4 sm:$0xff]  }
 0x131   :  { %2860 = vmatprep.subr.bf16.mxu0 %v3853_v13  ;;  %v3939_v13 = vld [vmem:[%s5253_s1 + $0xba0] ss:$8 sps:$4 sm:$0xff]  }
 0x133   :  { %2615 = vmatpush1.bf16.msra.mxu1 %v3848_v14  ;;  %v3944_v14 = vld [vmem:[%s5253_s1 + $0x5b4] ss:$8 sps:$4 sm:$0xff]  }
 0x134   :  { %2861 = vmatpush1.bf16.msra.mxu0 %v3851_v15  ;;  %2616 = vmatprep.subr.bf16.mxu1 %v3856_v16  ;;  %v3947_v15 = vld [vmem:[%s5253_s1 + $0xbb4] ss:$8 sps:$4 sm:$0xff]   ;;  %v3942_v16 = vld [vmem:[%s5253_s1 + $0x5b0] ss:$8 sps:$4 sm:$0xff]  }
 0x135   :  { %2862 = vmatprep.subr.bf16.mxu0 %v3859_v17  ;;  %v3945_v17 = vld [vmem:[%s5253_s1 + $0xbb0] ss:$8 sps:$4 sm:$0xff]  }
 0x137   :  { %2617 = vmatpush1.bf16.msra.mxu1 %v3854_v19  ;;  %v3950_v19 = vld [vmem:[%s5253_s1 + $0x5c4] ss:$8 sps:$4 sm:$0xff]  }
 0x138   :  { %2863 = vmatpush1.bf16.msra.mxu0 %v3857_v21  ;;  %2618 = vmatprep.subr.bf16.mxu1 %v3862_v22  ;;  %v3953_v21 = vld [vmem:[%s5253_s1 + $0xbc4] ss:$8 sps:$4 sm:$0xff]   ;;  %v3948_v22 = vld [vmem:[%s5253_s1 + $0x5c0] ss:$8 sps:$4 sm:$0xff]  }
 0x139   :  { %2864 = vmatprep.subr.bf16.mxu0 %v3865_v23  ;;  %v3951_v23 = vld [vmem:[%s5253_s1 + $0xbc0] ss:$8 sps:$4 sm:$0xff]  }
 0x13b   :  { %2619 = vmatpush1.bf16.msra.mxu1 %v3860_v26  ;;  %v3956_v26 = vld [vmem:[%s5253_s1 + $0x5d4] ss:$8 sps:$4 sm:$0xff]  }
 0x13c   :  { %2865 = vmatpush1.bf16.msra.mxu0 %v3863_v18  ;;  %2620 = vmatprep.subr.bf16.mxu1 %v3868_v27  ;;  %v3959_v18 = vld [vmem:[%s5253_s1 + $0xbd4] ss:$8 sps:$4 sm:$0xff]   ;;  %v3954_v27 = vld [vmem:[%s5253_s1 + $0x5d0] ss:$8 sps:$4 sm:$0xff]  }
 0x13d   :  { %2866 = vmatprep.subr.bf16.mxu0 %v3871_v28  ;;  %v3957_v28 = vld [vmem:[%s5253_s1 + $0xbd0] ss:$8 sps:$4 sm:$0xff]  }
 0x13f   :  { %2621 = vmatpush1.bf16.msra.mxu1 %v3866_v30  ;;  %v3962_v30 = vld [vmem:[%s5253_s1 + $0x5e4] ss:$8 sps:$4 sm:$0xff]  }
 0x140   :  { %2867 = vmatpush1.bf16.msra.mxu0 %v3869_v31  ;;  %2631 = vmatprep.subr.bf16.mxu1 %v3876_v24  ;;  %v3965_v31 = vld [vmem:[%s5253_s1 + $0xbe4] ss:$8 sps:$4 sm:$0xff]   ;;  %v3960_v24 = vld [vmem:[%s5253_s1 + $0x5e0] ss:$8 sps:$4 sm:$0xff]  }
 0x141   :  { %2877 = vmatprep.subr.bf16.mxu0 %v3881_v25  ;;  %v3963_v25 = vld [vmem:[%s5253_s1 + $0xbe0] ss:$8 sps:$4 sm:$0xff]  }
 0x142   :  { %2623 = vmatmul.mubr.bf16.vlgmr.msra.gmra.mrb[0].mxu1 %v2932_v32  ;;  %v3968_v32 = vld [vmem:[%s5253_s1 + $0x5f4] ss:$8 sps:$4 sm:$0xff]  }
 0x143   :  { %2869 = vmatmul.mubr.bf16.vlgmr.msra.gmra.mrb[0].mxu0 %v2944_v33  ;;  %2632 = vmatpush1.bf16.msra.mxu1 %v3874_v36  ;;  %v3971_v33 = vld [vmem:[%s5253_s1 + $0xbf4] ss:$8 sps:$4 sm:$0xff]   ;;  %v3966_v36 = vld [vmem:[%s5253_s1 + $0x5f0] ss:$8 sps:$4 sm:$0xff]  }
 0x144   :  { %2878 = vmatpush1.bf16.msra.mxu0 %v3879_v20  ;;  %2633 = vmatprep.subr.bf16.mxu1 %v3884_v29  ;;  %v3969_v20 = vld [vmem:[%s5253_s1 + $0xbf0] ss:$8 sps:$4 sm:$0xff]   ;;  %v2934_v29 = vcombine.low %v5043_v34, %v5043_v34 }
 0x145   :  { %2879 = vmatprep.subr.bf16.mxu0 %v3887_v37  ;;  %2663 = vmatprep.mubr.bf16.mxu1 %v2935_v38  ;;  %v2946_v37 = vcombine.low %v5048_v35, %v5048_v35  ;;  %v412_v38 = vlaneseq }
 0x146   :  { %2909 = vmatprep.mubr.bf16.mxu0 %v2947_v39 }
 0x147   :  { %2634 = vmatpush1.bf16.msra.mxu1 %v3882_v40  ;;  %v413_v39 = vshrl.u32 %v412_v38, 7 }
 0x148   :  { %2880 = vmatpush1.bf16.msra.mxu0 %v3885_v41  ;;  %2635 = vmatprep.subr.bf16.mxu1 %v3890_v42  ;;  %v410_v41 = vld [vmem:[%s5255_s2] sm:$0x3] }
 0x149   :  { %2881 = vmatprep.subr.bf16.mxu0 %v3893_v43  ;;  %v414_v40 = vsub.s32 0, %v413_v39  ;;  %v418_v42 = vsub.s32 1, %v413_v39 }
 0x14b   :  { %2636 = vmatpush1.bf16.msra.mxu1 %v3888_v44  ;;  %v415_v43 = vrot.slane %v410_v41, %v414_v40  ;;  %v419_v44 = vrot.slane %v410_v41, %v418_v42 }
 0x14c   :  { %2882 = vmatpush1.bf16.msra.mxu0 %v3891_v45  ;;  %2637 = vmatprep.subr.bf16.mxu1 %v3896_v46 }
 0x14d   :  { %2883 = vmatprep.subr.bf16.mxu0 %v3899_v47 }
 0x14f   :  { %2638 = vmatpush1.bf16.msra.mxu1 %v3894_v48 }
 0x150   :  { %2884 = vmatpush1.bf16.msra.mxu0 %v3897_v49  ;;  %2639 = vmatprep.subr.bf16.mxu1 %v3902_v50 }
 0x151   :  { %2885 = vmatprep.subr.bf16.mxu0 %v3905_v51 }
 0x153   :  { %2640 = vmatpush1.bf16.msra.mxu1 %v3900_v52 }
 0x154   :  { %2886 = vmatpush1.bf16.msra.mxu0 %v3903_v53  ;;  %2641 = vmatprep.subr.bf16.mxu1 %v3908_v54 }
 0x155   :  { %2887 = vmatprep.subr.bf16.mxu0 %v3911_v55 }
 0x157   :  { %2642 = vmatpush1.bf16.msra.mxu1 %v3906_v56 }
 0x158   :  { %2888 = vmatpush1.bf16.msra.mxu0 %v3909_v57  ;;  %2643 = vmatprep.subr.bf16.mxu1 %v3914_v58 }
 0x159   :  { %2889 = vmatprep.subr.bf16.mxu0 %v3917_v59 }
 0x15b   :  { %2644 = vmatpush1.bf16.msra.mxu1 %v3912_v60 }
 0x15c   :  { %2890 = vmatpush1.bf16.msra.mxu0 %v3915_v61  ;;  %2645 = vmatprep.subr.bf16.mxu1 %v3920_v62 }
 0x15d   :  { %2891 = vmatprep.subr.bf16.mxu0 %v3923_v63 }
 0x15f   :  { %2646 = vmatpush1.bf16.msra.mxu1 %v3918_v0 }
 0x160   :  { %2892 = vmatpush1.bf16.msra.mxu0 %v3921_v1  ;;  %2647 = vmatprep.subr.bf16.mxu1 %v3926_v2 }
 0x161   :  { %2893 = vmatprep.subr.bf16.mxu0 %v3929_v3 }
 0x163   :  { %2648 = vmatpush1.bf16.msra.mxu1 %v3924_v4 }
 0x164   :  { %2894 = vmatpush1.bf16.msra.mxu0 %v3927_v5  ;;  %2649 = vmatprep.subr.bf16.mxu1 %v3932_v6 }
 0x165   :  { %2895 = vmatprep.subr.bf16.mxu0 %v3935_v7 }
 0x167   :  { %2650 = vmatpush1.bf16.msra.mxu1 %v3930_v8 }
 0x168   :  { %2896 = vmatpush1.bf16.msra.mxu0 %v3933_v9  ;;  %2651 = vmatprep.subr.bf16.mxu1 %v3938_v10 }
 0x169   :  { %2897 = vmatprep.subr.bf16.mxu0 %v3941_v11 }
 0x16b   :  { %2652 = vmatpush1.bf16.msra.mxu1 %v3936_v12 }
 0x16c   :  { %2898 = vmatpush1.bf16.msra.mxu0 %v3939_v13  ;;  %2653 = vmatprep.subr.bf16.mxu1 %v3944_v14 }
 0x16d   :  { %2899 = vmatprep.subr.bf16.mxu0 %v3947_v15 }
 0x16f   :  { %2654 = vmatpush1.bf16.msra.mxu1 %v3942_v16 }
 0x170   :  { %2900 = vmatpush1.bf16.msra.mxu0 %v3945_v17  ;;  %2655 = vmatprep.subr.bf16.mxu1 %v3950_v19 }
 0x171   :  { %2901 = vmatprep.subr.bf16.mxu0 %v3953_v21 }
 0x173   :  { %2656 = vmatpush1.bf16.msra.mxu1 %v3948_v22 }
 0x174   :  { %2902 = vmatpush1.bf16.msra.mxu0 %v3951_v23  ;;  %2657 = vmatprep.subr.bf16.mxu1 %v3956_v26 }
 0x175   :  { %2903 = vmatprep.subr.bf16.mxu0 %v3959_v18 }
 0x177   :  { %2658 = vmatpush1.bf16.msra.mxu1 %v3954_v27 }
 0x178   :  { %2904 = vmatpush1.bf16.msra.mxu0 %v3957_v28  ;;  %2659 = vmatprep.subr.bf16.mxu1 %v3962_v30 }
 0x179   :  { %2905 = vmatprep.subr.bf16.mxu0 %v3965_v31 }
 0x17b   :  { %2660 = vmatpush1.bf16.msra.mxu1 %v3960_v24 }
 0x17c   :  { %2906 = vmatpush1.bf16.msra.mxu0 %v3963_v25  ;;  %2661 = vmatprep.subr.bf16.mxu1 %v3968_v32 }
 0x17d   :  { %2907 = vmatprep.subr.bf16.mxu0 %v3971_v33 }
 0x17f   :  { %2662 = vmatpush1.bf16.msra.mxu1 %v3966_v36 }
 0x180   :  { %2908 = vmatpush1.bf16.msra.mxu0 %v3969_v20 }
 0x182   :  { %2664 = vmatmul.mubr.bf16.vlgmr.msra.gmra.mrb[0].mxu1 %v2934_v29 }
 0x183   :  { %2910 = vmatmul.mubr.bf16.vlgmr.msra.gmra.mrb[0].mxu0 %v2946_v37 }
 0x255   :  { %v2665_v45 = vpop.f32.mrb[0].mxu1 }
 0x256   :  { %v2911_v46 = vpop.f32.mrb[0].mxu0  ;;  %v3332_v34 = vadd.f32 %v2665_v45, %v415_v43  ;;  %v2667_v47 = vpop.f32.mrb[1].mxu1 }
 0x257   :  { %v2913_v48 = vpop.f32.mrb[1].mxu0  ;;  %v3334_v35 = vadd.f32 %v2667_v47, %v419_v44  ;;  %v2669_v49 = vpop.f32.mrb[2].mxu1 }
 0x258   :  { %v2915_v50 = vpop.f32.mrb[2].mxu0  ;;  %v3333_v51 = vadd.f32 %v3332_v34, %v2911_v46  ;;  %v2670_v52 = vpop.f32.mrb[3].mxu1 }
 0x259   :  { %v2916_v53 = vpop.f32.mrb[3].mxu0  ;;  %v3335_v54 = vadd.f32 %v3334_v35, %v2913_v48 }
 0x25a   :  { %2918 = vst [vmem:[%s5256_s3] sm:$0xff] %v3333_v51 }
 0x25b   :  { %2919 = vst [vmem:[%s5256_s3 + $0x8] sm:$0xff] %v3335_v54 }

</bundles_post_ra>
